<compile_context>
chip_gen: v5e
topology: v5e:2x2
jax: 0.10.0
libtpu: 0.0.40
codegen_flags: <defaults>
</compile_context>

<pallas_src>
import functools

import jax
import jax.numpy as jnp
from jax.experimental import pallas as pl
from jax.experimental.pallas import tpu as pltpu


def _pool_out_size(n):
    # PyTorch AvgPool2d(kernel=3, stride=2, padding=1, ceil_mode=False)
    return (n + 2 * 1 - 3) // 2 + 1


def _level_shapes(h, w, sampling_times):
    shapes = []
    for _ in range(sampling_times):
        ho, wo = _pool_out_size(h), _pool_out_size(w)
        shapes.append((h, w, ho, wo))
        h, w = ho, wo
    return tuple(shapes), h, w


def _col_select(w, wo, dtype=jnp.float32):
    """S[c, j] = 1 iff input column c lies in the 3-tap window of output col j."""
    c = jax.lax.broadcasted_iota(jnp.int32, (w, wo), 0)
    j = jax.lax.broadcasted_iota(jnp.int32, (w, wo), 1)
    return (jnp.abs(c - 2 * j) <= 1).astype(dtype)


def _row_select(ho, h, dtype=jnp.float32):
    """T[o, r] = 1 iff input row r lies in the 3-tap window of output row o."""
    o = jax.lax.broadcasted_iota(jnp.int32, (ho, h), 0)
    r = jax.lax.broadcasted_iota(jnp.int32, (ho, h), 1)
    return (jnp.abs(r - 2 * o) <= 1).astype(dtype)


def _avg_pyramid_kernel(x_ref, o_ref, *, level_shapes):
    """One block of TP planes pushed through all pool levels entirely in VMEM."""
    tp = x_ref.shape[0]
    num_levels = len(level_shapes)
    hi = jax.lax.Precision.HIGHEST

    x = x_ref[...].astype(jnp.float32)                      # (TP, H, W)
    for (h, w, ho, wo) in level_shapes:                     # statically unrolled
        s_mat = _col_select(w, wo)                          # (w, wo)  0/1
        t_mat = _row_select(ho, h)                          # (ho, h)  0/1
        # Column pool: planes folded into the M dim -> one big MXU matmul.
        xs = jnp.dot(
            x.reshape(tp * h, w), s_mat,
            preferred_element_type=jnp.float32, precision=hi,
        ).reshape(tp, h, wo)                                # (TP, h, wo)
        # Row pool: batched matmul over the plane dim (T broadcast across it).
        t_b = jnp.broadcast_to(t_mat, (tp, ho, h))
        x = jnp.einsum(
            "por,prw->pow", t_b, xs,
            preferred_element_type=jnp.float32, precision=hi,
        )                                                   # (TP, ho, wo)

    out_h, out_w = level_shapes[-1][2], level_shapes[-1][3]
    # count_include_pad=True: constant divisor 9 per level -> one final scale.
    scale = jnp.float32(1.0 / (9.0 ** num_levels))
    o_ref[...] = (x * scale).reshape(tp, out_h * out_w).astype(o_ref.dtype)


def _choose_tp(p, h, w, itemsize):
    """Planes per block: biggest that fits a conservative per-block VMEM budget."""
    # Working set per block: double-buffered input + ~4 f32-plane temporaries
    # (x, xs, broadcast T, result). 12 MiB fits under every generation's
    # default scoped-VMEM limit (16 MiB on v5e, 32 MiB on v6e/v7x).
    budget = 12 * 1024 * 1024
    per_plane = h * w * (2 * itemsize + 16)
    tp = max(1, budget // per_plane)
    if p >= 16:                       # keep >= 2 grid blocks for v7x's 2 TCs
        tp = min(tp, p // 2)
    tp = min(tp, p)
    # The lane-dense (tp, ho*wo) output block needs a sublane-aligned tp.
    tp = max(8, (tp // 8) * 8)
    return int(tp)


def avg_downsampler(x_nchw, sampling_times):
    """Matches AvgDownsampler.forward: AvgPool2d(3, 2, 1) applied `sampling_times` times.

    x_nchw: (N, C, H, W)  ->  (N, C, H_out, W_out)
    """
    if sampling_times == 0:
        return x_nchw

    n, c, h, w = x_nchw.shape
    shapes, ho, wo = _level_shapes(h, w, sampling_times)

    p = n * c
    itemsize = jnp.dtype(x_nchw.dtype).itemsize
    tp = _choose_tp(p, h, w, itemsize)
    g = -(-p // tp)
    p_pad = g * tp

    x_planes = x_nchw.reshape(p, h, w)            # free reshape: channels never mix
    if p_pad != p:
        x_planes = jnp.pad(x_planes, ((0, p_pad - p), (0, 0), (0, 0)))

    # Advisory cost estimate for XLA scheduling around the custom call.
    flops = 0
    for (lh, lw, lho, lwo) in shapes:
        flops += p_pad * (2 * lh * lw * lwo + 2 * lho * lh * lwo)
    bytes_accessed = p_pad * (h * w + ho * wo) * itemsize

    blk_bytes = tp * h * w * (2 * itemsize + 16)
    vmem_limit = int(min(56 * 2**20, max(32 * 2**20, 2 * blk_bytes)))

    kernel = functools.partial(_avg_pyramid_kernel, level_shapes=shapes)

    out = pl.pallas_call(
        kernel,
        out_shape=jax.ShapeDtypeStruct((p_pad, ho * wo), x_nchw.dtype),
        grid=(g,),
        in_specs=[pl.BlockSpec((tp, h, w), lambda i: (i, 0, 0))],
        out_specs=pl.BlockSpec((tp, ho * wo), lambda i: (i, 0)),
        compiler_params=pltpu.CompilerParams(
            dimension_semantics=("parallel",),
            vmem_limit_bytes=vmem_limit),
        cost_estimate=pl.CostEstimate(
            flops=flops, transcendentals=0, bytes_accessed=bytes_accessed),
    )(x_planes)

    return out[:p].reshape(n, c, ho, wo)


def _reference(x, sampling_times):
    # nn.AvgPool2d(3, stride=2, padding=1), count_include_pad=True (default):
    # sum over the 3x3 window (zeros outside) divided by 9.
    for _ in range(sampling_times):
        x = jax.lax.reduce_window(
            x, 0.0, jax.lax.add,
            window_dimensions=(1, 1, 3, 3),
            window_strides=(1, 1, 2, 2),
            padding=((0, 0), (0, 0), (1, 1), (1, 1))) / 9.0
    return x


if __name__ == "__main__":
    # Small shapes consistent with the module: image batch, 3 pooling levels.
    N, C, H, W = 2, 4, 16, 16
    sampling_times = 3                      # 16 -> 8 -> 4 -> 2

    key = jax.random.PRNGKey(0)
    x = jax.random.normal(key, (N, C, H, W), dtype=jnp.float32)

    out = avg_downsampler(x, sampling_times)
    out = jax.block_until_ready(out)

    ref = _reference(x, sampling_times)
    assert out.shape == ref.shape == (N, C, 2, 2), (out.shape, ref.shape)
    assert jnp.allclose(out, ref, atol=1e-4, rtol=1e-4), "mismatch vs reference"

    print("KERNEL_OK")
</pallas_src>

<mosaic_0001>
module attributes {stable_mosaic.version = 11 : i64} {
  func.func @_avg_pyramid_kernel(%arg0: i32, %arg1: memref<8x16x16xf32, #tpu.memory_space<vmem>>, %arg2: memref<8x4xf32, #tpu.memory_space<vmem>>) attributes {dimension_semantics = [#tpu.dimension_semantics<parallel>], iteration_bounds = array<i64: 1>, scalar_prefetch = 0 : i64, scratch_operands = 0 : i64, tpu.core_type = #tpu.core_type<tc>, window_params = [{transform_indices = @transform_0, window_bounds = array<i64: 8, 16, 16>}, {transform_indices = @transform_1, window_bounds = array<i64: 8, 4>}]} {
    %c0 = arith.constant 0 : index
    %c0_0 = arith.constant 0 : index
    %c0_1 = arith.constant 0 : index
    %0 = vector.load %arg1[%c0, %c0_0, %c0_1] : memref<8x16x16xf32, #tpu.memory_space<vmem>>, vector<8x16x16xf32>
    %1 = tpu.iota {dimensions = array<i32: 0>} : vector<16x8xi32>
    %2 = tpu.iota {dimensions = array<i32: 1>} : vector<16x8xi32>
    %c2_i32 = arith.constant 2 : i32
    %3 = vector.broadcast %c2_i32 : i32 to vector<16x8xi32>
    %4 = arith.muli %3, %2 : vector<16x8xi32>
    %5 = arith.subi %1, %4 : vector<16x8xi32>
    %6 = math.absi %5 : vector<16x8xi32>
    %c1_i32 = arith.constant 1 : i32
    %7 = vector.broadcast %c1_i32 : i32 to vector<16x8xi32>
    %8 = arith.cmpi sle, %6, %7 : vector<16x8xi32>
    %9 = arith.extui %8 : vector<16x8xi1> to vector<16x8xi32>
    %10 = arith.sitofp %9 : vector<16x8xi32> to vector<16x8xf32>
    %11 = tpu.iota {dimensions = array<i32: 0>} : vector<8x16xi32>
    %12 = tpu.iota {dimensions = array<i32: 1>} : vector<8x16xi32>
    %c2_i32_2 = arith.constant 2 : i32
    %13 = vector.broadcast %c2_i32_2 : i32 to vector<8x16xi32>
    %14 = arith.muli %13, %11 : vector<8x16xi32>
    %15 = arith.subi %12, %14 : vector<8x16xi32>
    %16 = math.absi %15 : vector<8x16xi32>
    %c1_i32_3 = arith.constant 1 : i32
    %17 = vector.broadcast %c1_i32_3 : i32 to vector<8x16xi32>
    %18 = arith.cmpi sle, %16, %17 : vector<8x16xi32>
    %19 = arith.extui %18 : vector<8x16xi1> to vector<8x16xi32>
    %20 = arith.sitofp %19 : vector<8x16xi32> to vector<8x16xf32>
    %21 = vector.shape_cast %0 : vector<8x16x16xf32> to vector<128x16xf32>
    %cst = arith.constant dense<0.000000e+00> : vector<128x8xf32>
    %22 = tpu.matmul %21, %10, %cst {dimension_numbers = #tpu.dot_dimension_numbers<[1], [0], [0], [1], [0, 0, 1, 1], [], []>, precision = #tpu.contract_precision<fp32>} : vector<128x16xf32>, vector<16x8xf32>, vector<128x8xf32> -> vector<128x8xf32>
    %23 = vector.shape_cast %22 : vector<128x8xf32> to vector<8x16x8xf32>
    %24 = vector.shape_cast %20 : vector<8x16xf32> to vector<1x8x16xf32>
    %25 = vector.broadcast %24 : vector<1x8x16xf32> to vector<8x8x16xf32>
    "tpu.trace_start"() <{level = 10 : i32, message = "por,prw->pow"}> : () -> ()
    %cst_4 = arith.constant dense<0.000000e+00> : vector<8x8x8xf32>
    %26 = tpu.matmul %25, %23, %cst_4 {dimension_numbers = #tpu.dot_dimension_numbers<[2], [1], [1], [2], [0, 0, 0, 1, 1, 2], [0], [0]>, precision = #tpu.contract_precision<fp32>} : vector<8x8x16xf32>, vector<8x16x8xf32>, vector<8x8x8xf32> -> vector<8x8x8xf32>
    "tpu.trace_stop"() : () -> ()
    %27 = tpu.iota {dimensions = array<i32: 0>} : vector<8x4xi32>
    %28 = tpu.iota {dimensions = array<i32: 1>} : vector<8x4xi32>
    %c2_i32_5 = arith.constant 2 : i32
    %29 = vector.broadcast %c2_i32_5 : i32 to vector<8x4xi32>
    %30 = arith.muli %29, %28 : vector<8x4xi32>
    %31 = arith.subi %27, %30 : vector<8x4xi32>
    %32 = math.absi %31 : vector<8x4xi32>
    %c1_i32_6 = arith.constant 1 : i32
    %33 = vector.broadcast %c1_i32_6 : i32 to vector<8x4xi32>
    %34 = arith.cmpi sle, %32, %33 : vector<8x4xi32>
    %35 = arith.extui %34 : vector<8x4xi1> to vector<8x4xi32>
    %36 = arith.sitofp %35 : vector<8x4xi32> to vector<8x4xf32>
    %37 = tpu.iota {dimensions = array<i32: 0>} : vector<4x8xi32>
    %38 = tpu.iota {dimensions = array<i32: 1>} : vector<4x8xi32>
    %c2_i32_7 = arith.constant 2 : i32
    %39 = vector.broadcast %c2_i32_7 : i32 to vector<4x8xi32>
    %40 = arith.muli %39, %37 : vector<4x8xi32>
    %41 = arith.subi %38, %40 : vector<4x8xi32>
    %42 = math.absi %41 : vector<4x8xi32>
    %c1_i32_8 = arith.constant 1 : i32
    %43 = vector.broadcast %c1_i32_8 : i32 to vector<4x8xi32>
    %44 = arith.cmpi sle, %42, %43 : vector<4x8xi32>
    %45 = arith.extui %44 : vector<4x8xi1> to vector<4x8xi32>
    %46 = arith.sitofp %45 : vector<4x8xi32> to vector<4x8xf32>
    %47 = vector.shape_cast %26 : vector<8x8x8xf32> to vector<64x8xf32>
    %cst_9 = arith.constant dense<0.000000e+00> : vector<64x4xf32>
    %48 = tpu.matmul %47, %36, %cst_9 {dimension_numbers = #tpu.dot_dimension_numbers<[1], [0], [0], [1], [0, 0, 1, 1], [], []>, precision = #tpu.contract_precision<fp32>} : vector<64x8xf32>, vector<8x4xf32>, vector<64x4xf32> -> vector<64x4xf32>
    %49 = vector.shape_cast %48 : vector<64x4xf32> to vector<8x8x4xf32>
    %50 = vector.shape_cast %46 : vector<4x8xf32> to vector<1x4x8xf32>
    %51 = vector.broadcast %50 : vector<1x4x8xf32> to vector<8x4x8xf32>
    "tpu.trace_start"() <{level = 10 : i32, message = "por,prw->pow"}> : () -> ()
    %cst_10 = arith.constant dense<0.000000e+00> : vector<8x4x4xf32>
    %52 = tpu.matmul %51, %49, %cst_10 {dimension_numbers = #tpu.dot_dimension_numbers<[2], [1], [1], [2], [0, 0, 0, 1, 1, 2], [0], [0]>, precision = #tpu.contract_precision<fp32>} : vector<8x4x8xf32>, vector<8x8x4xf32>, vector<8x4x4xf32> -> vector<8x4x4xf32>
    "tpu.trace_stop"() : () -> ()
    %53 = tpu.iota {dimensions = array<i32: 0>} : vector<4x2xi32>
    %54 = tpu.iota {dimensions = array<i32: 1>} : vector<4x2xi32>
    %c2_i32_11 = arith.constant 2 : i32
    %55 = vector.broadcast %c2_i32_11 : i32 to vector<4x2xi32>
    %56 = arith.muli %55, %54 : vector<4x2xi32>
    %57 = arith.subi %53, %56 : vector<4x2xi32>
    %58 = math.absi %57 : vector<4x2xi32>
    %c1_i32_12 = arith.constant 1 : i32
    %59 = vector.broadcast %c1_i32_12 : i32 to vector<4x2xi32>
    %60 = arith.cmpi sle, %58, %59 : vector<4x2xi32>
    %61 = arith.extui %60 : vector<4x2xi1> to vector<4x2xi32>
    %62 = arith.sitofp %61 : vector<4x2xi32> to vector<4x2xf32>
    %63 = tpu.iota {dimensions = array<i32: 0>} : vector<2x4xi32>
    %64 = tpu.iota {dimensions = array<i32: 1>} : vector<2x4xi32>
    %c2_i32_13 = arith.constant 2 : i32
    %65 = vector.broadcast %c2_i32_13 : i32 to vector<2x4xi32>
    %66 = arith.muli %65, %63 : vector<2x4xi32>
    %67 = arith.subi %64, %66 : vector<2x4xi32>
    %68 = math.absi %67 : vector<2x4xi32>
    %c1_i32_14 = arith.constant 1 : i32
    %69 = vector.broadcast %c1_i32_14 : i32 to vector<2x4xi32>
    %70 = arith.cmpi sle, %68, %69 : vector<2x4xi32>
    %71 = arith.extui %70 : vector<2x4xi1> to vector<2x4xi32>
    %72 = arith.sitofp %71 : vector<2x4xi32> to vector<2x4xf32>
    %73 = vector.shape_cast %52 : vector<8x4x4xf32> to vector<32x4xf32>
    %cst_15 = arith.constant dense<0.000000e+00> : vector<32x2xf32>
    %74 = tpu.matmul %73, %62, %cst_15 {dimension_numbers = #tpu.dot_dimension_numbers<[1], [0], [0], [1], [0, 0, 1, 1], [], []>, precision = #tpu.contract_precision<fp32>} : vector<32x4xf32>, vector<4x2xf32>, vector<32x2xf32> -> vector<32x2xf32>
    %75 = vector.shape_cast %74 : vector<32x2xf32> to vector<8x4x2xf32>
    %76 = vector.shape_cast %72 : vector<2x4xf32> to vector<1x2x4xf32>
    %77 = vector.broadcast %76 : vector<1x2x4xf32> to vector<8x2x4xf32>
    "tpu.trace_start"() <{level = 10 : i32, message = "por,prw->pow"}> : () -> ()
    %cst_16 = arith.constant dense<0.000000e+00> : vector<8x2x2xf32>
    %78 = tpu.matmul %77, %75, %cst_16 {dimension_numbers = #tpu.dot_dimension_numbers<[2], [1], [1], [2], [0, 0, 0, 1, 1, 2], [0], [0]>, precision = #tpu.contract_precision<fp32>} : vector<8x2x4xf32>, vector<8x4x2xf32>, vector<8x2x2xf32> -> vector<8x2x2xf32>
    "tpu.trace_stop"() : () -> ()
    %cst_17 = arith.constant 0.00137174211 : f32
    %79 = vector.broadcast %cst_17 : f32 to vector<8x2x2xf32>
    %80 = arith.mulf %78, %79 : vector<8x2x2xf32>
    %81 = vector.shape_cast %80 : vector<8x2x2xf32> to vector<8x4xf32>
    %c0_18 = arith.constant 0 : index
    %c0_19 = arith.constant 0 : index
    %82 = vector.load %arg2[%c0_18, %c0_19] : memref<8x4xf32, #tpu.memory_space<vmem>>, vector<8x4xf32>
    tpu.vector_store %arg2[%c0_18, %c0_19], %81 {strides = array<i32>} : memref<8x4xf32, #tpu.memory_space<vmem>>, vector<8x4xf32>,
    return
  }
  func.func @transform_0(%arg0: i32) -> (i32, i32, i32) {
    %c0_i32 = arith.constant 0 : i32
    %c0_i32_0 = arith.constant 0 : i32
    %c0_i32_1 = arith.constant 0 : i32
    return %arg0, %c0_i32, %c0_i32_0 : i32, i32, i32
  }
  func.func @transform_1(%arg0: i32) -> (i32, i32) {
    %c0_i32 = arith.constant 0 : i32
    %c0_i32_0 = arith.constant 0 : i32
    return %arg0, %c0_i32 : i32, i32
  }
}

</mosaic_0001>

<bundles_post_ra>
// kernel: tpu_custom_call.1
= control target key start
LH: loop header
LB: loop body
LE: loop exit
PB: predicated region body
PF: predicated region fallthrough
CT: control target
= control target key end

     0   :  { %6 = vsyncpa [#allocation3], 0  ;;  %s5229_s9 = smov [#allocation2]   ;;  %s5230_s11 = smov 128   ;;  %s6060_s0 = inlined_call_operand.hbm [shape: f32[8,16,16], index: 0, kind: input, shape index: {}]   ;;  %s6061_s1 = inlined_call_operand.vmem [shape: f32[8,4], index: 1, kind: output, shape index: {}]  }
   0x1   :  { %s11_s8 = sshll.u32 %s6060_s0, 4  ;;  %s13_s10 = sshll.u32 %s5229_s9, 4  ;;  %s12_s8 = int_to_ptr.hbm [resolvable:$true] %s11_s8  ;;  %s14_s10 = int_to_ptr.vmem [resolvable:$true] %s13_s10 }
   0x2   :  { %s5231_s12 = smov 8  }
   0x3   :  { %19 = dma.hbm_to_vmem [thread:$0]  %s12_s8, 2048, %s14_s10, [#allocation3], %s5230_s11, %s5230_s11, %s5231_s12  }
   0x4   :  { %5227 = dma.done.wait [#allocation3], 2048  }
   0x5   :  { %5228 = vsyncadd [#allocation3], 4294965248  ;;  %v40_v0 = vlaneseq  ;;  %vm68_vm0 = vcmask 130048   ;;  %v24_v9 = vld [vmem:[#allocation2] sm:$0xff]  ;;  %v25_v10 = vld [vmem:[#allocation2 + $0x8] sm:$0xff]  ;;  %v5232_v23 = vmov 1.0  }
   0x6   :  { %v26_v13 = vld [vmem:[#allocation2 + $0x10] sm:$0xff]  ;;  %v70_v15 = vsel %vm68_vm0, %v24_v9, 0  ;;  %v73_v16 = vsel %vm68_vm0, %v25_v10, 0  ;;  %v5233_v24 = vmov 0.0   ;;  %v27_v41 = vld [vmem:[#allocation2 + $0x18] sm:$0xff]  ;;  %v28_v50 = vld [vmem:[#allocation2 + $0x20] sm:$0xff] }
   0x7   :  { %v41_v1 = vshrl.u32 %v40_v0, 7  ;;  %v44_v2 = vand.u32 127, %v40_v0  ;;  %v5254_v19 = vand.u32 4294901760, %v70_v15  ;;  %v5256_v20 = vand.u32 4294901760, %v73_v16  ;;  %v29_v57 = vld [vmem:[#allocation2 + $0x28] sm:$0xff]  ;;  %v30_v0 = vld [vmem:[#allocation2 + $0x30] sm:$0xff] }
   0x8   :  { %v76_v22 = vsel %vm68_vm0, %v26_v13, 0  ;;  %v79_v46 = vsel %vm68_vm0, %v27_v41, 0  ;;  %v82_v53 = vsel %vm68_vm0, %v28_v50, 0  ;;  %v85_v60 = vsel %vm68_vm0, %v29_v57, 0  ;;  %s5236_s0 = smov 2  }
   0x9   :  { %v42_v3 = vadd.s32 8, %v41_v1  ;;  %v45_v4 = vmul.u32 2, %v44_v2  ;;  %v60_v5 = vmul.u32 2, %v41_v1  ;;  %v136_v27 = vsub.f32 %v70_v15, %v5254_v19 }
   0xa   :  { %v144_v31 = vsub.f32 %v73_v16, %v5256_v20  ;;  %v5286_v37 = vand.u32 4294901760, %v76_v22  ;;  %v5298_v49 = vand.u32 4294901760, %v79_v46  ;;  %v5308_v56 = vand.u32 4294901760, %v82_v53 }
   0xb   :  { %v46_v6 = vsub.s32 %v41_v1, %v45_v4  ;;  %v47_v7 = vsub.s32 %v42_v3, %v45_v4  ;;  %v61_v8 = vsub.s32 %v44_v2, %v60_v5  ;;  %v137_v32 = vand.u32 4294901760, %v136_v27 }
   0xc   :  { %v145_v36 = vand.u32 4294901760, %v144_v31  ;;  %v152_v45 = vsub.f32 %v76_v22, %v5286_v37  ;;  %v160_v52 = vsub.f32 %v79_v46, %v5298_v49  ;;  %v168_v59 = vsub.f32 %v82_v53, %v5308_v56  ;;  %v36_v53 = vld [vmem:[#allocation2 + $0x60] sm:$0xff] }
   0xd   :  { %vm48_vm1 = vcmp.lt.s32.totalorder %v46_v6, 0  ;;  %v49_v11 = vsub.s32 0, %v46_v6  ;;  %vm51_vm2 = vcmp.lt.s32.totalorder %v47_v7, 0  ;;  %v52_v12 = vsub.s32 0, %v47_v7 }
   0xe   :  { %vm62_vm3 = vcmp.lt.s32.totalorder %v61_v8, 0  ;;  %v63_v14 = vsub.s32 0, %v61_v8  ;;  %v138_v35 = vsub.f32 %v136_v27, %v137_v32  ;;  %v146_v44 = vsub.f32 %v144_v31, %v145_v36 }
   0xf   :  { %v5252_v17 = vsel %vm48_vm1, %v49_v11, %v46_v6  ;;  %v53_v18 = vsel %vm51_vm2, %v52_v12, %v47_v7  ;;  %v153_v48 = vand.u32 4294901760, %v152_v45  ;;  %v161_v55 = vand.u32 4294901760, %v160_v52  ;;  %v31_v7 = vld [vmem:[#allocation2 + $0x38] sm:$0xff] }
  0x10   :  { %vm54_vm4 = vcmp.le.s32.totalorder %v5252_v17, 1  ;;  %vm55_vm5 = vcmp.le.s32.totalorder %v53_v18, 1  ;;  %v64_v21 = vsel %vm62_vm3, %v63_v14, %v61_v8  ;;  %v139_v40 = vand.u32 4294901760, %v138_v35  ;;  %v32_v14 = vld [vmem:[#allocation2 + $0x40] sm:$0xff] }
  0x11   :  { %vm65_vm6 = vcmp.le.s32.totalorder %v64_v21, 1  ;;  %5111 = vmatpush.msk.msra.mxu0 %vm55_vm5, %v5232_v23  ;;  %v5264_v25 = vsel %vm54_vm4, 1.0, %v5233_v24  ;;  %v5109_v26 = vsel %vm55_vm5, 1.0, %v5233_v24  ;;  %5113 = vmatpush.msk.msra.mxu3 %vm55_vm5, %v5232_v23  ;;  %v147_v47 = vand.u32 4294901760, %v146_v44 }
  0x12   :  { %v5270_v28 = vsel %vm65_vm6, 1.0, %v5233_v24  ;;  %v279_v29 = vsub.f32 %v5109_v26, %v5109_v26  ;;  %v5274_v30 = vsub.f32 %v5264_v25, %v5264_v25  ;;  %v154_v51 = vsub.f32 %v152_v45, %v153_v48  ;;  %v33_v26 = vld [vmem:[#allocation2 + $0x48] sm:$0xff] }
  0x13   :  { %5112 = vmatpush.msk.msra.mxu0 %vm54_vm4, %v5232_v23  ;;  %5114 = vmatpush.msk.msra.mxu3 %vm54_vm4, %v5232_v23  ;;  %v162_v58 = vsub.f32 %v160_v52, %v161_v55  ;;  %v169_v62 = vand.u32 4294901760, %v168_v59  ;;  %v5313_v63 = vand.u32 4294901760, %v85_v60  ;;  %v88_v3 = vsel %vm68_vm0, %v30_v0, 0 }
  0x14   :  { %371 = vmatpush.msra.mxu2 %v279_v29  ;;  %v280_v33 = vand.u32 4294901760, %v279_v29  ;;  %v5284_v34 = vand.u32 4294901760, %v5274_v30  ;;  %477 = vmatmul.f32.vlgmr.msra.gmra.mxu3 %v137_v32  ;;  %v155_v54 = vand.u32 4294901760, %v154_v51  ;;  %v5318_v6 = vand.u32 4294901760, %v88_v3 }
  0x15   :  { %140 = vmatmul.f32.vlgmr.msra.gmra.mxu0 %v139_v40  ;;  %v163_v61 = vand.u32 4294901760, %v162_v58  ;;  %v170_v1 = vsub.f32 %v168_v59, %v169_v62  ;;  %v176_v2 = vsub.f32 %v85_v60, %v5313_v63  ;;  %v91_v10 = vsel %vm68_vm0, %v31_v7, 0 }
  0x16   :  { %374 = vmatpush.msra.mxu2 %v5274_v30  ;;  %v281_v38 = vsub.f32 %v279_v29, %v280_v33  ;;  %v287_v39 = vsub.f32 %v5274_v30, %v5284_v34  ;;  %588 = vmatpush.msrb.mxu0 %v280_v33  ;;  %v184_v9 = vsub.f32 %v88_v3, %v5318_v6  ;;  %v5323_v13 = vand.u32 4294901760, %v91_v10 }
  0x17   :  { %377 = vmatmul.f32.vlgmr.msra.gmra.mxu2 %v136_v27  ;;  %v171_v4 = vand.u32 4294901760, %v170_v1  ;;  %v177_v5 = vand.u32 4294901760, %v176_v2  ;;  %v94_v18 = vsel %vm68_vm0, %v32_v14, 0  ;;  %v106_v57 = vsel %vm68_vm0, %v36_v53, 0  ;;  %v39_v14 = vld [vmem:[#allocation2 + $0x78] sm:$0xff] }
  0x18   :  { %v282_v42 = vand.u32 4294901760, %v281_v38  ;;  %v5291_v43 = vand.u32 4294901760, %v287_v39  ;;  %592 = vmatpush.msrb.mxu0 %v5284_v34  ;;  %v185_v12 = vand.u32 4294901760, %v184_v9  ;;  %v192_v16 = vsub.f32 %v91_v10, %v5323_v13 }
  0x19   :  { %v178_v8 = vsub.f32 %v176_v2, %v177_v5  ;;  %v5328_v24 = vand.u32 4294901760, %v94_v18  ;;  %v5348_v60 = vand.u32 4294901760, %v106_v57  ;;  %vm2016_vm7 = vcmask 64512  }
  0x1a   :  { %283 = vmatpush.msra.mxu1 %v282_v42  ;;  %v186_v15 = vsub.f32 %v184_v9, %v185_v12  ;;  %v193_v22 = vand.u32 4294901760, %v192_v16  ;;  %vm3610_vm8 = vcmask 1043456   ;;  %vm3601_vm9 = vcmask 31744  }
  0x1b   :  { %v179_v11 = vand.u32 4294901760, %v178_v8  ;;  %v200_v29 = vsub.f32 %v94_v18, %v5328_v24  ;;  %v232_v0 = vsub.f32 %v106_v57, %v5348_v60  ;;  %v115_v18 = vsel %vm68_vm0, %v39_v14, 0 }
  0x1c   :  { %289 = vmatpush.msra.mxu1 %v5291_v43  ;;  %483 = vmatmul.f32.gmra.mxu3 %v145_v36  ;;  %v187_v21 = vand.u32 4294901760, %v186_v15  ;;  %v194_v27 = vsub.f32 %v192_v16, %v193_v22  ;;  %v34_v36 = vld [vmem:[#allocation2 + $0x50] sm:$0xff]  ;;  %vm5056_vm10 = vcmask 1047556   ;;  %vm5100_vm11 = vcmask 15360  }
  0x1d   :  { %291 = vmatmul.f32.vlgmr.msra.gmra.mxu1 %v5254_v19  ;;  %148 = vmatmul.f32.gmra.mxu0 %v147_v47  ;;  %v201_v33 = vand.u32 4294901760, %v200_v29  ;;  %v100_v40 = vsel %vm68_vm0, %v34_v36, 0  ;;  %v233_v3 = vand.u32 4294901760, %v232_v0 }
  0x1e   :  { %5115 = vmatpush.msk.msrb.mxu1 %vm55_vm5, %v5232_v23  ;;  %v195_v32 = vand.u32 4294901760, %v194_v27  ;;  %v5338_v44 = vand.u32 4294901760, %v100_v40 }
  0x1f   :  { %382 = vmatmul.f32.gmra.mxu2 %v144_v31  ;;  %v97_v31 = vsel %vm68_vm0, %v33_v26, 0  ;;  %v202_v38 = vsub.f32 %v200_v29, %v201_v33  ;;  %v234_v7 = vsub.f32 %v232_v0, %v233_v3  ;;  %v5363_v26 = vand.u32 4294901760, %v115_v18 }
  0x20   :  { %5116 = vmatpush.msk.msrb.mxu1 %vm54_vm4, %v5232_v23  ;;  %v5333_v35 = vand.u32 4294901760, %v97_v31  ;;  %v216_v47 = vsub.f32 %v100_v40, %v5338_v44 }
  0x21   :  { %v203_v41 = vand.u32 4294901760, %v202_v38  ;;  %v235_v10 = vand.u32 4294901760, %v234_v7 }
  0x22   :  { %v208_v39 = vsub.f32 %v97_v31, %v5333_v35  ;;  %v217_v51 = vand.u32 4294901760, %v216_v47 }
  0x24   :  { %489 = vmatmul.f32.gmra.mxu3 %v153_v48  ;;  %v209_v42 = vand.u32 4294901760, %v208_v39 }
  0x25   :  { %295 = vmatmul.f32.gmra.mxu1 %v5256_v20  ;;  %156 = vmatmul.f32.gmra.mxu0 %v155_v54  ;;  %v218_v54 = vsub.f32 %v216_v47, %v217_v51 }
  0x26   :  { %v210_v46 = vsub.f32 %v208_v39, %v209_v42 }
  0x27   :  { %387 = vmatmul.f32.gmra.mxu2 %v152_v45  ;;  %v35_v45 = vld [vmem:[#allocation2 + $0x58] sm:$0xff]  ;;  %v219_v58 = vand.u32 4294901760, %v218_v54 }
  0x28   :  { %v103_v48 = vsel %vm68_vm0, %v35_v45, 0  ;;  %v211_v50 = vand.u32 4294901760, %v210_v46 }
  0x2c   :  { %495 = vmatmul.f32.gmra.mxu3 %v161_v55 }
  0x2d   :  { %299 = vmatmul.f32.gmra.mxu1 %v5286_v37  ;;  %164 = vmatmul.f32.gmra.mxu0 %v163_v61  ;;  %v37_v61 = vld [vmem:[#allocation2 + $0x68] sm:$0xff] }
  0x2e   :  { %v109_v1 = vsel %vm68_vm0, %v37_v61, 0 }
  0x2f   :  { %392 = vmatmul.f32.gmra.mxu2 %v160_v52  ;;  %v5343_v52 = vand.u32 4294901760, %v103_v48 }
  0x31   :  { %v224_v55 = vsub.f32 %v103_v48, %v5343_v52 }
  0x34   :  { %501 = vmatmul.f32.gmra.mxu3 %v169_v62 }
  0x35   :  { %303 = vmatmul.f32.gmra.mxu1 %v5298_v49  ;;  %172 = vmatmul.f32.gmra.mxu0 %v171_v4  ;;  %v5353_v4 = vand.u32 4294901760, %v109_v1 }
  0x37   :  { %397 = vmatmul.f32.gmra.mxu2 %v168_v59  ;;  %v225_v59 = vand.u32 4294901760, %v224_v55  ;;  %v240_v8 = vsub.f32 %v109_v1, %v5353_v4 }
  0x39   :  { %v226_v62 = vsub.f32 %v224_v55, %v225_v59 }
  0x3c   :  { %507 = vmatmul.f32.gmra.mxu3 %v177_v5  ;;  %v38_v5 = vld [vmem:[#allocation2 + $0x70] sm:$0xff] }
  0x3d   :  { %307 = vmatmul.f32.gmra.mxu1 %v5308_v56  ;;  %180 = vmatmul.f32.gmra.mxu0 %v179_v11  ;;  %v241_v11 = vand.u32 4294901760, %v240_v8 }
  0x3f   :  { %402 = vmatmul.f32.gmra.mxu2 %v176_v2  ;;  %v227_v2 = vand.u32 4294901760, %v226_v62  ;;  %v242_v15 = vsub.f32 %v240_v8, %v241_v11 }
  0x44   :  { %513 = vmatmul.f32.gmra.mxu3 %v185_v12 }
  0x45   :  { %311 = vmatmul.f32.gmra.mxu1 %v5313_v63  ;;  %188 = vmatmul.f32.gmra.mxu0 %v187_v21  ;;  %v243_v21 = vand.u32 4294901760, %v242_v15 }
  0x47   :  { %407 = vmatmul.f32.gmra.mxu2 %v184_v9  ;;  %v112_v9 = vsel %vm68_vm0, %v38_v5, 0 }
  0x48   :  { %v5358_v12 = vand.u32 4294901760, %v112_v9 }
  0x4c   :  { %519 = vmatmul.f32.gmra.mxu3 %v193_v22 }
  0x4d   :  { %315 = vmatmul.f32.gmra.mxu1 %v5318_v6  ;;  %196 = vmatmul.f32.gmra.mxu0 %v195_v32 }
  0x4f   :  { %412 = vmatmul.f32.gmra.mxu2 %v192_v16  ;;  %v248_v16 = vsub.f32 %v112_v9, %v5358_v12 }
  0x51   :  { %v249_v22 = vand.u32 4294901760, %v248_v16 }
  0x53   :  { %v250_v27 = vsub.f32 %v248_v16, %v249_v22 }
  0x54   :  { %525 = vmatmul.f32.gmra.mxu3 %v201_v33 }
  0x55   :  { %319 = vmatmul.f32.gmra.mxu1 %v5323_v13  ;;  %204 = vmatmul.f32.gmra.mxu0 %v203_v41  ;;  %v251_v31 = vand.u32 4294901760, %v250_v27 }
  0x57   :  { %417 = vmatmul.f32.gmra.mxu2 %v200_v29  ;;  %v256_v29 = vsub.f32 %v115_v18, %v5363_v26 }
  0x59   :  { %v257_v32 = vand.u32 4294901760, %v256_v29 }
  0x5b   :  { %v258_v33 = vsub.f32 %v256_v29, %v257_v32 }
  0x5c   :  { %531 = vmatmul.f32.gmra.mxu3 %v209_v42 }
  0x5d   :  { %323 = vmatmul.f32.gmra.mxu1 %v5328_v24  ;;  %212 = vmatmul.f32.gmra.mxu0 %v211_v50  ;;  %v259_v36 = vand.u32 4294901760, %v258_v33 }
  0x5f   :  { %422 = vmatmul.f32.gmra.mxu2 %v208_v39 }
  0x64   :  { %537 = vmatmul.f32.gmra.mxu3 %v217_v51 }
  0x65   :  { %327 = vmatmul.f32.gmra.mxu1 %v5333_v35  ;;  %220 = vmatmul.f32.gmra.mxu0 %v219_v58 }
  0x67   :  { %427 = vmatmul.f32.gmra.mxu2 %v216_v47 }
  0x6c   :  { %543 = vmatmul.f32.gmra.mxu3 %v225_v59 }
  0x6d   :  { %331 = vmatmul.f32.gmra.mxu1 %v5338_v44  ;;  %228 = vmatmul.f32.gmra.mxu0 %v227_v2 }
  0x6f   :  { %432 = vmatmul.f32.gmra.mxu2 %v224_v55 }
  0x74   :  { %549 = vmatmul.f32.gmra.mxu3 %v233_v3 }
  0x75   :  { %335 = vmatmul.f32.gmra.mxu1 %v5343_v52  ;;  %236 = vmatmul.f32.gmra.mxu0 %v235_v10 }
  0x77   :  { %437 = vmatmul.f32.gmra.mxu2 %v232_v0 }
  0x7c   :  { %555 = vmatmul.f32.gmra.mxu3 %v241_v11 }
  0x7d   :  { %339 = vmatmul.f32.gmra.mxu1 %v5348_v60  ;;  %244 = vmatmul.f32.gmra.mxu0 %v243_v21 }
  0x7f   :  { %442 = vmatmul.f32.gmra.mxu2 %v240_v8 }
  0x84   :  { %561 = vmatmul.f32.gmra.mxu3 %v249_v22 }
  0x85   :  { %343 = vmatmul.f32.gmra.mxu1 %v5353_v4  ;;  %252 = vmatmul.f32.gmra.mxu0 %v251_v31 }
  0x87   :  { %447 = vmatmul.f32.gmra.mxu2 %v248_v16 }
  0x8c   :  { %567 = vmatmul.f32.gmra.mxu3 %v257_v32 }
  0x8d   :  { %347 = vmatmul.f32.gmra.mxu1 %v5358_v12  ;;  %260 = vmatmul.f32.gmra.mxu0 %v259_v36 }
  0x8f   :  { %452 = vmatmul.f32.gmra.mxu2 %v256_v29 }
  0x92   :  { %v5369_v38 = vpop.f32.mrf.mxu0 }
  0x95   :  { %351 = vmatmul.f32.gmra.mxu1 %v5363_v26  ;;  %594 = vmatmul.f32.vlgmr.msrb.gmra.mxu0 %v5254_v19 }
  0x97   :  { %v478_v59 = vpop.f32.mrf.mxu3 }
  0x9a   :  { %v5372_v39 = vpop.f32.mrf.mxu1  ;;  %v5375_v40 = vpop.f32.mrf.mxu0 }
  0x9b   :  { %v293_v7 = vadd.f32 %v5372_v39, %v5369_v38 }
  0x9d   :  { %677 = vmatmul.f32.vlgmr.msrb.gmra.mxu1 %v5254_v19  ;;  %598 = vmatmul.f32.gmra.mxu0 %v5256_v20 }
  0x9f   :  { %v484_v0 = vpop.f32.mrf.mxu3 }
  0xa2   :  { %v5378_v41 = vpop.f32.mrf.mxu1  ;;  %v5381_v42 = vpop.f32.mrf.mxu0 }
  0xa3   :  { %v297_v15 = vadd.f32 %v5378_v41, %v5375_v40 }
  0xa5   :  { %681 = vmatmul.f32.gmra.mxu1 %v5256_v20  ;;  %602 = vmatmul.f32.gmra.mxu0 %v5286_v37 }
  0xa7   :  { %v490_v3 = vpop.f32.mrf.mxu3 }
  0xaa   :  { %v5384_v45 = vpop.f32.mrf.mxu1  ;;  %v5387_v46 = vpop.f32.mrf.mxu0 }
  0xab   :  { %v301_v36 = vadd.f32 %v5384_v45, %v5381_v42 }
  0xad   :  { %685 = vmatmul.f32.gmra.mxu1 %v5286_v37  ;;  %606 = vmatmul.f32.gmra.mxu0 %v5298_v49 }
  0xaf   :  { %v496_v10 = vpop.f32.mrf.mxu3 }
  0xb2   :  { %v5390_v19 = vpop.f32.mrf.mxu1  ;;  %v5393_v47 = vpop.f32.mrf.mxu0 }
  0xb5   :  { %689 = vmatmul.f32.gmra.mxu1 %v5298_v49  ;;  %610 = vmatmul.f32.gmra.mxu0 %v5308_v56 }
  0xb7   :  { %v5473_v31 = vpop.f32.mrf.mxu3 }
  0xba   :  { %v5396_v20 = vpop.f32.mrf.mxu1  ;;  %v5399_v48 = vpop.f32.mrf.mxu0 }
  0xbd   :  { %693 = vmatmul.f32.gmra.mxu1 %v5308_v56  ;;  %614 = vmatmul.f32.gmra.mxu0 %v5313_v63 }
  0xbf   :  { %v508_v45 = vpop.f32.mrf.mxu3 }
  0xc2   :  { %v5402_v37 = vpop.f32.mrf.mxu1  ;;  %v5405_v50 = vpop.f32.mrf.mxu0 }
  0xc5   :  { %697 = vmatmul.f32.gmra.mxu1 %v5313_v63  ;;  %618 = vmatmul.f32.gmra.mxu0 %v5318_v6 }
  0xca   :  { %v5408_v49 = vpop.f32.mrf.mxu1  ;;  %v5411_v51 = vpop.f32.mrf.mxu0 }
  0xcd   :  { %701 = vmatmul.f32.gmra.mxu1 %v5318_v6  ;;  %622 = vmatmul.f32.gmra.mxu0 %v5323_v13 }
  0xd2   :  { %v5414_v56 = vpop.f32.mrf.mxu1  ;;  %v5417_v53 = vpop.f32.mrf.mxu0 }
  0xd5   :  { %705 = vmatmul.f32.gmra.mxu1 %v5323_v13  ;;  %626 = vmatmul.f32.gmra.mxu0 %v5328_v24 }
  0xda   :  { %v5420_v63 = vpop.f32.mrf.mxu1  ;;  %v5423_v54 = vpop.f32.mrf.mxu0 }
  0xdd   :  { %709 = vmatmul.f32.gmra.mxu1 %v5328_v24  ;;  %630 = vmatmul.f32.gmra.mxu0 %v5333_v35  ;;  %v378_v24 = vpop.f32.mrf.mxu2 }
  0xe2   :  { %v5426_v6 = vpop.f32.mrf.mxu1  ;;  %v5429_v55 = vpop.f32.mrf.mxu0 }
  0xe5   :  { %713 = vmatmul.f32.gmra.mxu1 %v5333_v35  ;;  %634 = vmatmul.f32.gmra.mxu0 %v5338_v44  ;;  %v383_v62 = vpop.f32.mrf.mxu2 }
  0xe6   :  { %v384_v27 = vadd.f32 %v383_v62, %v297_v15 }
  0xe8   :  { %v485_v33 = vadd.f32 %v484_v0, %v384_v27  ;;  %v305_v0 = vadd.f32 %v5390_v19, %v5387_v46 }
  0xea   :  { %v5432_v13 = vpop.f32.mrf.mxu1  ;;  %v5435_v57 = vpop.f32.mrf.mxu0 }
  0xed   :  { %717 = vmatmul.f32.gmra.mxu1 %v5338_v44  ;;  %638 = vmatmul.f32.gmra.mxu0 %v5343_v52 }
  0xf2   :  { %v5438_v58 = vpop.f32.mrf.mxu1  ;;  %v5441_v61 = vpop.f32.mrf.mxu0 }
  0xf5   :  { %721 = vmatmul.f32.gmra.mxu1 %v5343_v52  ;;  %642 = vmatmul.f32.gmra.mxu0 %v5348_v60  ;;  %v388_v52 = vpop.f32.mrf.mxu2 }
  0xfa   :  { %v5444_v35 = vpop.f32.mrf.mxu1  ;;  %v5447_v44 = vpop.f32.mrf.mxu0 }
  0xfd   :  { %725 = vmatmul.f32.gmra.mxu1 %v5348_v60  ;;  %646 = vmatmul.f32.gmra.mxu0 %v5353_v4  ;;  %v393_v8 = vpop.f32.mrf.mxu2 }
 0x102   :  { %v5450_v1 = vpop.f32.mrf.mxu1  ;;  %v5453_v2 = vpop.f32.mrf.mxu0 }
 0x105   :  { %729 = vmatmul.f32.gmra.mxu1 %v5353_v4  ;;  %650 = vmatmul.f32.gmra.mxu0 %v5358_v12  ;;  %v379_v4 = vadd.f32 %v378_v24, %v293_v7  ;;  %v398_v18 = vpop.f32.mrf.mxu2  ;;  %v389_v24 = vadd.f32 %v388_v52, %v301_v36  ;;  %v394_v52 = vadd.f32 %v393_v8, %v305_v0 }
 0x107   :  { %v479_v14 = vadd.f32 %v478_v59, %v379_v4  ;;  %v491_v15 = vadd.f32 %v490_v3, %v389_v24  ;;  %v497_v19 = vadd.f32 %v496_v10, %v394_v52  ;;  %v5491_v24 = vpop.f32.mrf.mxu3 }
 0x10a   :  { %v5456_v5 = vpop.f32.mrf.mxu1  ;;  %v5459_v60 = vpop.f32.mrf.mxu0 }
 0x10d   :  { %733 = vmatmul.f32.gmra.mxu1 %v5358_v12  ;;  %654 = vmatmul.f32.gmra.mxu0 %v5363_v26  ;;  %v742_v12 = vsel %vm68_vm0, %v5270_v28, 0  ;;  %v403_v7 = vpop.f32.mrf.mxu2 }
 0x10e   :  { %v5471_v22 = vsub.f32 %v742_v12, %v742_v12 }
 0x112   :  { %v5464_v9 = vpop.f32.mrf.mxu1  ;;  %v595_v11 = vpop.f32.mrf.mxu0 }
 0x113   :  { %v596_v16 = vadd.f32 %v595_v11, %v479_v14 }
 0x115   :  { %737 = vmatmul.f32.gmra.mxu1 %v5363_v26  ;;  %v5476_v26 = vand.u32 4294901760, %v5471_v22  ;;  %v5487_v36 = vpop.f32.mrf.mxu2 }
 0x117   :  { %v765_v41 = vsub.f32 %v5471_v22, %v5476_v26 }
 0x119   :  { %v5482_v14 = vand.u32 4294901760, %v765_v41 }
 0x11a   :  { %v678_v21 = vpop.f32.mrf.mxu1  ;;  %v599_v32 = vpop.f32.mrf.mxu0 }
 0x11b   :  { %v679_v29 = vadd.f32 %v678_v21, %v596_v16  ;;  %v600_v39 = vadd.f32 %v599_v32, %v485_v33 }
 0x11d   :  { %v760_v38 = vand.u32 4294901760, %v679_v29 }
 0x11f   :  { %v792_v59 = vsub.f32 %v679_v29, %v760_v38 }
 0x121   :  { %v793_v42 = vand.u32 4294901760, %v792_v59 }
 0x122   :  { %v682_v40 = vpop.f32.mrf.mxu1  ;;  %v603_v11 = vpop.f32.mrf.mxu0 }
 0x123   :  { %v683_v62 = vadd.f32 %v682_v40, %v600_v39  ;;  %v604_v16 = vadd.f32 %v603_v11, %v491_v15  ;;  %v794_v33 = vsub.f32 %v792_v59, %v793_v42 }
 0x125   :  { %v758_v4 = vand.u32 4294901760, %v683_v62  ;;  %v795_v40 = vand.u32 4294901760, %v794_v33 }
 0x127   :  { %v786_v12 = vsub.f32 %v683_v62, %v758_v4  ;;  %759 = vmatpush.msrb.mxu2 %v758_v4 }
 0x129   :  { %761 = vmatpush.msrb.mxu2 %v760_v38  ;;  %v787_v21 = vand.u32 4294901760, %v786_v12 }
 0x12a   :  { %v686_v27 = vpop.f32.mrf.mxu1  ;;  %767 = vmatmul.f32.vlgmr.msrb.gmra.mxu2 %v5482_v14  ;;  %v607_v46 = vpop.f32.mrf.mxu0 }
 0x12b   :  { %v687_v29 = vadd.f32 %v686_v27, %v604_v16  ;;  %818 = vmatpush.msra.mxu2 %v786_v12  ;;  %v788_v32 = vsub.f32 %v786_v12, %v787_v21  ;;  %v608_v41 = vadd.f32 %v607_v46, %v497_v19  ;;  %v313_v12 = vadd.f32 %v5402_v37, %v5399_v48  ;;  %v520_v37 = vpop.f32.mrf.mxu3 }
 0x12d   :  { %821 = vmatpush.msra.mxu2 %v792_v59  ;;  %v789_v3 = vand.u32 4294901760, %v788_v32  ;;  %v5489_v39 = vand.u32 4294901760, %v687_v29  ;;  %v309_v59 = vadd.f32 %v5396_v20, %v5393_v47 }
 0x12f   :  { %870 = vmatpush.msrb.mxu2 %v787_v21  ;;  %790 = vmatpush.msrb.mxu3 %v789_v3  ;;  %v951_v10 = vsub.f32 %v687_v29, %v5489_v39  ;;  %v399_v0 = vadd.f32 %v398_v18, %v309_v59  ;;  %v413_v21 = vpop.f32.mrf.mxu2  ;;  %v404_v18 = vadd.f32 %v403_v7, %v313_v12 }
 0x130   :  { %v317_v12 = vadd.f32 %v5408_v49, %v5405_v50 }
 0x131   :  { %874 = vmatpush.msrb.mxu2 %v793_v42  ;;  %796 = vmatpush.msrb.mxu3 %v795_v40  ;;  %v952_v16 = vand.u32 4294901760, %v951_v10  ;;  %v503_v20 = vadd.f32 %v5473_v31, %v399_v0  ;;  %v509_v32 = vadd.f32 %v508_v45, %v404_v18 }
 0x132   :  { %v690_v8 = vpop.f32.mrf.mxu1  ;;  %5117 = vmatmul.msk.f32.vlgmr.msrb.gmra.mxu3 %vm68_vm0, %v5270_v28  ;;  %824 = vmatmul.f32.vlgmr.msra.gmra.mxu2 %v5471_v22  ;;  %v611_v15 = vpop.f32.mrf.mxu0 }
 0x133   :  { %v691_v62 = vadd.f32 %v690_v8, %v608_v41  ;;  %843 = vmatpush.msra.mxu3 %v758_v4  ;;  %v953_v48 = vsub.f32 %v951_v10, %v952_v16  ;;  %v612_v52 = vadd.f32 %v611_v15, %v503_v20  ;;  %v5514_v45 = vpop.f32.mrf.mxu3 }
 0x135   :  { %v917_v11 = vand.u32 4294901760, %v691_v62  ;;  %845 = vmatpush.msra.mxu3 %v760_v38  ;;  %v954_v3 = vand.u32 4294901760, %v953_v48 }
 0x137   :  { %895 = vmatpush.msrb.mxu3 %v758_v4  ;;  %v945_v42 = vsub.f32 %v691_v62, %v917_v11  ;;  %918 = vmatpush.msra.mxu2 %v917_v11  ;;  %v5506_v19 = vpop.f32.mrf.mxu2  ;;  %v321_v62 = vadd.f32 %v5414_v56, %v5411_v51 }
 0x139   :  { %897 = vmatpush.msrb.mxu3 %v760_v38  ;;  %v946_v27 = vand.u32 4294901760, %v945_v42  ;;  %920 = vmatpush.msra.mxu2 %v5489_v39 }
 0x13a   :  { %v694_v47 = vpop.f32.mrf.mxu1  ;;  %849 = vmatmul.f32.vlgmr.msra.gmra.mxu3 %v5476_v26  ;;  %5118 = vmatmul.msk.f32.vlgmr.msrb.gmra.mxu2 %vm68_vm0, %v5270_v28  ;;  %v615_v38 = vpop.f32.mrf.mxu0 }
 0x13b   :  { %977 = vmatpush.msrb.mxu2 %v945_v42  ;;  %v947_v4 = vsub.f32 %v945_v42, %v946_v27  ;;  %v695_v33 = vadd.f32 %v694_v47, %v612_v52  ;;  %v616_v46 = vadd.f32 %v615_v38, %v509_v32  ;;  %v409_v47 = vadd.f32 %v5487_v36, %v317_v12  ;;  %v532_v18 = vpop.f32.mrf.mxu3 }
 0x13d   :  { %980 = vmatpush.msrb.mxu2 %v951_v10  ;;  %v948_v29 = vand.u32 4294901760, %v947_v4  ;;  %v5511_v31 = vand.u32 4294901760, %v695_v33  ;;  %v515_v50 = vadd.f32 %v5491_v24, %v409_v47 }
 0x13f   :  { %949 = vmatpush.msra.mxu3 %v948_v29  ;;  %v1110_v59 = vsub.f32 %v695_v33, %v5511_v31 }
 0x141   :  { %955 = vmatpush.msra.mxu3 %v954_v3  ;;  %v1111_v42 = vand.u32 4294901760, %v1110_v59 }
 0x142   :  { %v698_v40 = vpop.f32.mrf.mxu1  ;;  %5119 = vmatmul.msk.f32.vlgmr.msrb.gmra.mxu3 %vm68_vm0, %v5270_v28  ;;  %926 = vmatmul.f32.vlgmr.msra.gmra.mxu2 %v5482_v14  ;;  %v619_v8 = vpop.f32.mrf.mxu0 }
 0x143   :  { %v699_v7 = vadd.f32 %v698_v40, %v616_v46  ;;  %1002 = vmatpush.msrb.mxu3 %v917_v11  ;;  %1029 = vmatpush.msra.mxu2 %v946_v27  ;;  %v414_v27 = vadd.f32 %v413_v21, %v321_v62  ;;  %v1112_v20 = vsub.f32 %v1110_v59, %v1111_v42  ;;  %v538_v32 = vpop.f32.mrf.mxu3 }
 0x144   :  { %v325_v62 = vadd.f32 %v5420_v63, %v5417_v53  ;;  %v337_v53 = vadd.f32 %v5438_v58, %v5435_v57 }
 0x145   :  { %v1076_v41 = vand.u32 4294901760, %v699_v7  ;;  %1004 = vmatpush.msrb.mxu3 %v5489_v39  ;;  %1033 = vmatpush.msra.mxu2 %v952_v16  ;;  %v423_v16 = vpop.f32.mrf.mxu2  ;;  %v521_v4 = vadd.f32 %v520_v37, %v414_v27 }
 0x146   :  { %v419_v27 = vadd.f32 %v5506_v19, %v325_v62 }
 0x147   :  { %v1104_v10 = vsub.f32 %v699_v7, %v1076_v41 }
 0x149   :  { %v1105_v15 = vand.u32 4294901760, %v1104_v10 }
 0x14a   :  { %v702_v0 = vpop.f32.mrf.mxu1  ;;  %5120 = vmatmul.msk.f32.vlgmr.msra.gmra.mxu3 %vm68_vm0, %v5270_v28  ;;  %983 = vmatmul.f32.vlgmr.msrb.gmra.mxu2 %v5471_v22  ;;  %v623_v56 = vpop.f32.mrf.mxu0 }
 0x14b   :  { %1054 = vmatpush.msra.mxu3 %v917_v11  ;;  %1077 = vmatpush.msrb.mxu2 %v1076_v41  ;;  %v1106_v51 = vsub.f32 %v1104_v10, %v1105_v15  ;;  %v624_v49 = vadd.f32 %v623_v56, %v521_v4  ;;  %v620_v11 = vadd.f32 %v619_v8, %v515_v50 }
 0x14c   :  { %v329_v8 = vadd.f32 %v5426_v6, %v5423_v54  ;;  %v333_v6 = vadd.f32 %v5432_v13, %v5429_v55 }
 0x14d   :  { %1056 = vmatpush.msra.mxu3 %v5489_v39  ;;  %1079 = vmatpush.msrb.mxu2 %v5511_v31  ;;  %v1107_v48 = vand.u32 4294901760, %v1106_v51  ;;  %v1113_v39 = vand.u32 4294901760, %v1112_v20  ;;  %v428_v36 = vpop.f32.mrf.mxu2  ;;  %v703_v37 = vadd.f32 %v702_v0, %v620_v11  ;;  %v544_v0 = vpop.f32.mrf.mxu3 }
 0x14e   :  { %v424_v12 = vadd.f32 %v423_v16, %v329_v8  ;;  %v429_v56 = vadd.f32 %v428_v36, %v333_v6 }
 0x14f   :  { %v5536_v24 = vand.u32 4294901760, %v703_v37 }
 0x150   :  { %v539_v58 = vadd.f32 %v538_v32, %v429_v56 }
 0x151   :  { %v1269_v40 = vsub.f32 %v703_v37, %v5536_v24 }
 0x152   :  { %v706_v52 = vpop.f32.mrf.mxu1  ;;  %1008 = vmatmul.f32.vlgmr.msrb.gmra.mxu3 %v5476_v26  ;;  %5121 = vmatmul.msk.f32.vlgmr.msra.gmra.mxu2 %vm68_vm0, %v5270_v28  ;;  %v627_v29 = vpop.f32.mrf.mxu0 }
 0x153   :  { %1108 = vmatpush.msrb.mxu3 %v1107_v48  ;;  %1136 = vmatpush.msra.mxu2 %v1104_v10  ;;  %v707_v21 = vadd.f32 %v706_v52, %v624_v49  ;;  %v341_v52 = vadd.f32 %v5444_v35, %v5441_v61 }
 0x155   :  { %1114 = vmatpush.msrb.mxu3 %v1113_v39  ;;  %1139 = vmatpush.msra.mxu2 %v1110_v59  ;;  %v5531_v38 = vand.u32 4294901760, %v707_v21  ;;  %v433_v7 = vpop.f32.mrf.mxu2 }
 0x156   :  { %v434_v55 = vadd.f32 %v433_v7, %v337_v53 }
 0x157   :  { %v1263_v3 = vsub.f32 %v707_v21, %v5531_v38 }
 0x158   :  { %v545_v48 = vadd.f32 %v544_v0, %v434_v55  ;;  %v349_v55 = vadd.f32 %v5456_v5, %v5453_v2 }
 0x159   :  { %v1264_v59 = vand.u32 4294901760, %v1263_v3 }
 0x15a   :  { %v710_v33 = vpop.f32.mrf.mxu1  ;;  %5122 = vmatmul.msk.f32.vlgmr.msra.gmra.mxu3 %vm68_vm0, %v5270_v28  ;;  %1085 = vmatmul.f32.vlgmr.msrb.gmra.mxu2 %v5482_v14  ;;  %v631_v46 = vpop.f32.mrf.mxu0 }
 0x15b   :  { %1161 = vmatpush.msra.mxu3 %v1076_v41  ;;  %1188 = vmatpush.msrb.mxu2 %v1105_v15  ;;  %v1270_v15 = vand.u32 4294901760, %v1269_v40  ;;  %v1265_v54 = vsub.f32 %v1263_v3, %v1264_v59 }
 0x15d   :  { %1163 = vmatpush.msra.mxu3 %v5511_v31  ;;  %1192 = vmatpush.msrb.mxu2 %v1111_v42  ;;  %v1271_v63 = vsub.f32 %v1269_v40, %v1270_v15  ;;  %v1266_v51 = vand.u32 4294901760, %v1265_v54  ;;  %v438_v47 = vpop.f32.mrf.mxu2 }
 0x15e   :  { %v439_v36 = vadd.f32 %v438_v47, %v341_v52 }
 0x15f   :  { %v1272_v19 = vand.u32 4294901760, %v1271_v63 }
 0x162   :  { %v714_v10 = vpop.f32.mrf.mxu1  ;;  %5123 = vmatmul.msk.f32.vlgmr.msrb.gmra.mxu3 %vm68_vm0, %v5270_v28  ;;  %1142 = vmatmul.f32.vlgmr.msra.gmra.mxu2 %v5471_v22  ;;  %v635_v42 = vpop.f32.mrf.mxu0 }
 0x163   :  { %1213 = vmatpush.msrb.mxu3 %v1076_v41  ;;  %1236 = vmatpush.msra.mxu2 %v5531_v38  ;;  %v533_v41 = vadd.f32 %v532_v18, %v424_v12  ;;  %v550_v18 = vpop.f32.mrf.mxu3  ;;  %v636_v49 = vadd.f32 %v635_v42, %v539_v58 }
 0x165   :  { %1215 = vmatpush.msrb.mxu3 %v5511_v31  ;;  %1238 = vmatpush.msra.mxu2 %v5536_v24  ;;  %v527_v31 = vadd.f32 %v5514_v45, %v419_v27  ;;  %v632_v13 = vadd.f32 %v631_v46, %v533_v41  ;;  %v443_v61 = vpop.f32.mrf.mxu2  ;;  %v551_v46 = vadd.f32 %v550_v18, %v439_v36 }
 0x167   :  { %v628_v20 = vadd.f32 %v627_v29, %v527_v31  ;;  %v715_v57 = vadd.f32 %v714_v10, %v632_v13 }
 0x169   :  { %v711_v50 = vadd.f32 %v710_v33, %v628_v20  ;;  %v5562_v39 = vand.u32 4294901760, %v715_v57 }
 0x16a   :  { %v718_v16 = vpop.f32.mrf.mxu1  ;;  %1167 = vmatmul.f32.vlgmr.msra.gmra.mxu3 %v5476_v26  ;;  %5124 = vmatmul.msk.f32.vlgmr.msrb.gmra.mxu2 %vm68_vm0, %v5270_v28  ;;  %v639_v4 = vpop.f32.mrf.mxu0 }
 0x16b   :  { %1267 = vmatpush.msra.mxu3 %v1266_v51  ;;  %1295 = vmatpush.msrb.mxu2 %v1263_v3  ;;  %v640_v45 = vadd.f32 %v639_v4, %v545_v48  ;;  %v719_v11 = vadd.f32 %v718_v16, %v636_v49  ;;  %v5567_v29 = vand.u32 4294901760, %v711_v50  ;;  %v5571_v35 = vsub.f32 %v715_v57, %v5562_v39 }
 0x16d   :  { %1273 = vmatpush.msra.mxu3 %v1272_v19  ;;  %1298 = vmatpush.msrb.mxu2 %v1269_v40  ;;  %v5576_v33 = vand.u32 4294901760, %v719_v11  ;;  %v345_v40 = vadd.f32 %v5450_v1, %v5447_v44  ;;  %v5581_v7 = vsub.f32 %v711_v50, %v5567_v29  ;;  %v1423_v10 = vand.u32 4294901760, %v5571_v35  ;;  %v448_v6 = vpop.f32.mrf.mxu2 }
 0x16e   :  { %v353_v19 = vadd.f32 %v5464_v9, %v5459_v60  ;;  %v449_v4 = vadd.f32 %v448_v6, %v349_v55 }
 0x16f   :  { %v444_v1 = vadd.f32 %v443_v61, %v345_v40  ;;  %v1429_v12 = vand.u32 4294901760, %v5581_v7  ;;  %v1424_v54 = vsub.f32 %v5571_v35, %v1423_v10 }
 0x171   :  { %v1430_v53 = vsub.f32 %v5581_v7, %v1429_v12  ;;  %v1425_v41 = vand.u32 4294901760, %v1424_v54 }
 0x172   :  { %v722_v21 = vpop.f32.mrf.mxu1  ;;  %5125 = vmatmul.msk.f32.vlgmr.msrb.gmra.mxu3 %vm68_vm0, %v5270_v28  ;;  %1244 = vmatmul.f32.vlgmr.msra.gmra.mxu2 %v5482_v14  ;;  %v643_v3 = vpop.f32.mrf.mxu0 }
 0x173   :  { %v723_v37 = vadd.f32 %v722_v21, %v640_v45  ;;  %1320 = vmatpush.msrb.mxu3 %v5531_v38  ;;  %1347 = vmatpush.msra.mxu2 %v1264_v59  ;;  %v556_v59 = vpop.f32.mrf.mxu3  ;;  %v644_v62 = vadd.f32 %v643_v3, %v551_v46  ;;  %v1431_v16 = vand.u32 4294901760, %v1430_v53 }
 0x174   :  { %v557_v27 = vadd.f32 %v556_v59, %v444_v1 }
 0x175   :  { %v5573_v32 = vand.u32 4294901760, %v723_v37  ;;  %1322 = vmatpush.msrb.mxu3 %v5536_v24  ;;  %1351 = vmatpush.msra.mxu2 %v1270_v15  ;;  %v5591_v15 = vsub.f32 %v719_v11, %v5576_v33  ;;  %v453_v58 = vpop.f32.mrf.mxu2 }
 0x176   :  { %v454_v2 = vadd.f32 %v453_v58, %v353_v19 }
 0x177   :  { %v5584_v8 = vsub.f32 %v723_v37, %v5573_v32  ;;  %1638 = vmatpush.msra.mxu1 %v5573_v32  ;;  %v1588_v46 = vand.u32 4294901760, %v5591_v15 }
 0x179   :  { %1613 = vmatpush.msra.mxu0 %v5584_v8  ;;  %1640 = vmatpush.msra.mxu1 %v5576_v33  ;;  %v1582_v36 = vand.u32 4294901760, %v5584_v8 }
 0x17a   :  { %v726_v44 = vpop.f32.mrf.mxu1  ;;  %5126 = vmatmul.msk.f32.vlgmr.msra.gmra.mxu3 %vm68_vm0, %v5270_v28  ;;  %1301 = vmatmul.f32.vlgmr.msrb.gmra.mxu2 %v5471_v22  ;;  %v647_v42 = vpop.f32.mrf.mxu0 }
 0x17b   :  { %v727_v0 = vadd.f32 %v726_v44, %v644_v62  ;;  %1372 = vmatpush.msra.mxu3 %v5531_v38  ;;  %1395 = vmatpush.msrb.mxu2 %v5562_v39  ;;  %v648_v63 = vadd.f32 %v647_v42, %v557_v27  ;;  %v562_v51 = vpop.f32.mrf.mxu3 }
 0x17c   :  { %1616 = vmatpush.msra.mxu0 %v5591_v15  ;;  %1644 = vmatmul.f32.vlgmr.msra.gmra.mxu1 %v5476_v26  ;;  %v563_v50 = vadd.f32 %v562_v51, %v449_v4 }
 0x17d   :  { %1374 = vmatpush.msra.mxu3 %v5536_v24  ;;  %1397 = vmatpush.msrb.mxu2 %v5567_v29  ;;  %v5605_v38 = vand.u32 4294901760, %v727_v0 }
 0x17e   :  { %1619 = vmatmul.f32.vlgmr.msra.gmra.mxu0 %v5471_v22 }
 0x17f   :  { %v5612_v24 = vsub.f32 %v727_v0, %v5605_v38 }
 0x181   :  { %v1747_v57 = vand.u32 4294901760, %v5612_v24 }
 0x182   :  { %v730_v56 = vpop.f32.mrf.mxu1  ;;  %1326 = vmatmul.f32.vlgmr.msrb.gmra.mxu3 %v5476_v26  ;;  %5127 = vmatmul.msk.f32.vlgmr.msra.gmra.mxu2 %vm68_vm0, %v5270_v28  ;;  %v651_v13 = vpop.f32.mrf.mxu0 }
 0x183   :  { %v731_v47 = vadd.f32 %v730_v56, %v648_v63  ;;  %1426 = vmatpush.msrb.mxu3 %v1425_v41  ;;  %1454 = vmatpush.msra.mxu2 %v5571_v35  ;;  %v1748_v60 = vsub.f32 %v5612_v24, %v1747_v57  ;;  %v568_v9 = vpop.f32.mrf.mxu3  ;;  %v652_v21 = vadd.f32 %v651_v13, %v563_v50 }
 0x184   :  { %v569_v45 = vadd.f32 %v568_v9, %v454_v2 }
 0x185   :  { %v5615_v31 = vand.u32 4294901760, %v731_v47  ;;  %1432 = vmatpush.msrb.mxu3 %v1431_v16  ;;  %1457 = vmatpush.msra.mxu2 %v5581_v7  ;;  %v1749_v11 = vand.u32 4294901760, %v1748_v60  ;;  %v1583_v7 = vsub.f32 %v5584_v8, %v1582_v36 }
 0x187   :  { %v5623_v20 = vsub.f32 %v731_v47, %v5615_v31  ;;  %1713 = vmatpush.msrb.mxu0 %v5615_v31  ;;  %v1584_v62 = vand.u32 4294901760, %v1583_v7 }
 0x189   :  { %1715 = vmatpush.msrb.mxu0 %v5605_v38  ;;  %v1741_v18 = vand.u32 4294901760, %v5623_v20 }
 0x18a   :  { %v734_v48 = vpop.f32.mrf.mxu1  ;;  %5128 = vmatmul.msk.f32.vlgmr.msra.gmra.mxu3 %vm68_vm0, %v5270_v28  ;;  %1403 = vmatmul.f32.vlgmr.msrb.gmra.mxu2 %v5482_v14  ;;  %v655_v49 = vpop.f32.mrf.mxu0 }
 0x18b   :  { %1479 = vmatpush.msra.mxu3 %v5562_v39  ;;  %1506 = vmatpush.msrb.mxu2 %v1423_v10  ;;  %v1742_v5 = vsub.f32 %v5623_v20, %v1741_v18  ;;  %v656_v37 = vadd.f32 %v655_v49, %v569_v45  ;;  %v735_v61 = vadd.f32 %v734_v48, %v652_v21 }
 0x18c   :  { %1824 = vmatpush.msra.mxu0 %v1741_v18 }
 0x18d   :  { %1481 = vmatpush.msra.mxu3 %v5567_v29  ;;  %1510 = vmatpush.msrb.mxu2 %v1429_v12  ;;  %v1743_v52 = vand.u32 4294901760, %v1742_v5  ;;  %v1873_v59 = vand.u32 4294901760, %v735_v61 }
 0x18e   :  { %1828 = vmatpush.msra.mxu0 %v1747_v57 }
 0x18f   :  { %1744 = vmatpush.msrb.mxu1 %v1743_v52  ;;  %1721 = vmatmul.f32.vlgmr.msrb.gmra.mxu0 %v5482_v14 }
 0x191   :  { %1750 = vmatpush.msrb.mxu1 %v1749_v11 }
 0x192   :  { %v738_v35 = vpop.f32.mrf.mxu1  ;;  %5129 = vmatmul.msk.f32.vlgmr.msrb.gmra.mxu3 %vm68_vm0, %v5270_v28  ;;  %1460 = vmatmul.f32.vlgmr.msra.gmra.mxu2 %v5471_v22 }
 0x193   :  { %v739_v3 = vadd.f32 %v738_v35, %v656_v37  ;;  %1531 = vmatpush.msrb.mxu3 %v5562_v39  ;;  %1554 = vmatpush.msra.mxu2 %v5573_v32  ;;  %v1589_v39 = vsub.f32 %v5591_v15, %v1588_v46 }
 0x194   :  { %1849 = vmatpush.msra.mxu1 %v5615_v31 }
 0x195   :  { %v1871_v40 = vand.u32 4294901760, %v739_v3  ;;  %1533 = vmatpush.msrb.mxu3 %v5567_v29  ;;  %1556 = vmatpush.msra.mxu2 %v5576_v33  ;;  %v1905_v29 = vsub.f32 %v735_v61, %v1873_v59  ;;  %v1590_v8 = vand.u32 4294901760, %v1589_v39 }
 0x196   :  { %1851 = vmatpush.msra.mxu1 %v5605_v38 }
 0x197   :  { %v1899_v10 = vsub.f32 %v739_v3, %v1871_v40  ;;  %5135 = vmatmul.msk.f32.vlgmr.msrb.gmra.mxu1 %vm68_vm0, %v5270_v28  ;;  %5136 = vmatmul.msk.f32.vlgmr.msra.gmra.mxu0 %vm68_vm0, %v5270_v28 }
 0x198   :  { %1956 = vmatpush.msrb.mxu1 %v1871_v40 }
 0x199   :  { %1931 = vmatpush.msrb.mxu0 %v1899_v10 }
 0x19a   :  { %1958 = vmatpush.msrb.mxu1 %v1873_v59  ;;  %1485 = vmatmul.f32.vlgmr.msra.gmra.mxu3 %v5476_v26 }
 0x19b   :  { %5130 = vmatmul.msk.f32.vlgmr.msrb.gmra.mxu2 %vm68_vm0, %v5270_v28  ;;  %1585 = vmatpush.msra.mxu3 %v1584_v62 }
 0x19c   :  { %1665 = vmatpush.msrb.mxu2 %v1582_v36  ;;  %1934 = vmatpush.msrb.mxu0 %v1905_v29 }
 0x19d   :  { %1591 = vmatpush.msra.mxu3 %v1590_v8 }
 0x19e   :  { %5141 = vmatpush.msk.msra.mxu0 %vm54_vm4, %v5232_v23  ;;  %1669 = vmatpush.msrb.mxu2 %v1588_v46 }
 0x19f   :  { %5137 = vmatmul.msk.f32.vlgmr.msra.gmra.mxu1 %vm68_vm0, %v5270_v28  ;;  %1937 = vmatmul.f32.vlgmr.msrb.gmra.mxu0 %v5471_v22 }
 0x1a0   :  { %2143 = vmatpush.msra.mxu1 %v5291_v43  ;;  %2320 = vmatpush.msrb.mxu0 %v5284_v34  ;;  %v1900_v34 = vand.u32 4294901760, %v1899_v10  ;;  %v1906_v43 = vand.u32 4294901760, %v1905_v29 }
 0x1a2   :  { %5131 = vmatmul.msk.f32.vlgmr.msrb.gmra.mxu3 %vm68_vm0, %v5270_v28  ;;  %v1907_v15 = vsub.f32 %v1905_v29, %v1906_v43 }
 0x1a3   :  { %1562 = vmatmul.f32.vlgmr.msra.gmra.mxu2 %v5482_v14  ;;  %1690 = vmatpush.msrb.mxu3 %v5573_v32  ;;  %v1901_v32 = vsub.f32 %v1899_v10, %v1900_v34 }
 0x1a4   :  { %1772 = vmatpush.msra.mxu2 %v5623_v20  ;;  %v1908_v1 = vand.u32 4294901760, %v1907_v15 }
 0x1a5   :  { %1692 = vmatpush.msrb.mxu3 %v5576_v33  ;;  %v1902_v44 = vand.u32 4294901760, %v1901_v32 }
 0x1a6   :  { %1775 = vmatpush.msra.mxu2 %v5612_v24 }
 0x1a7   :  { %1962 = vmatmul.f32.vlgmr.msrb.gmra.mxu1 %v5476_v26 }
 0x1a8   :  { %5143 = vmatpush.msk.msrb.mxu1 %vm54_vm4, %v5232_v23 }
 0x1aa   :  { %5132 = vmatmul.msk.f32.vlgmr.msra.gmra.mxu3 %vm68_vm0, %v5270_v28 }
 0x1ab   :  { %5133 = vmatmul.msk.f32.vlgmr.msrb.gmra.mxu2 %vm68_vm0, %v5270_v28  ;;  %1797 = vmatpush.msra.mxu3 %v5615_v31 }
 0x1ac   :  { %1872 = vmatpush.msrb.mxu2 %v1871_v40 }
 0x1ad   :  { %1799 = vmatpush.msra.mxu3 %v5605_v38  ;;  %v768_v33 = vpop.f32.mrf.mxu2 }
 0x1ae   :  { %1874 = vmatpush.msrb.mxu2 %v1873_v59 }
 0x1b2   :  { %5134 = vmatmul.msk.f32.vlgmr.msrb.gmra.mxu3 %vm68_vm0, %v5270_v28 }
 0x1b3   :  { %1778 = vmatmul.f32.vlgmr.msra.gmra.mxu2 %v5471_v22  ;;  %1903 = vmatpush.msrb.mxu3 %v1902_v44 }
 0x1b4   :  { %1983 = vmatpush.msra.mxu2 %v1900_v34 }
 0x1b5   :  { %1909 = vmatpush.msrb.mxu3 %v1908_v1  ;;  %v799_v0 = vpop.f32.mrf.mxu3  ;;  %v825_v12 = vpop.f32.mrf.mxu2 }
 0x1b6   :  { %1987 = vmatpush.msra.mxu2 %v1906_v43  ;;  %v800_v54 = vadd.f32 %v799_v0, %v768_v33 }
 0x1b8   :  { %v826_v27 = vadd.f32 %v825_v12, %v800_v54 }
 0x1ba   :  { %1803 = vmatmul.f32.vlgmr.msra.gmra.mxu3 %v5476_v26 }
 0x1bb   :  { %2008 = vmatpush.msra.mxu3 %v1871_v40  ;;  %1880 = vmatmul.f32.vlgmr.msrb.gmra.mxu2 %v5482_v14 }
 0x1bc   :  { %2194 = vmatpush.msrb.mxu2 %v5274_v30 }
 0x1bd   :  { %2010 = vmatpush.msra.mxu3 %v1873_v59  ;;  %v850_v6 = vpop.f32.mrf.mxu3  ;;  %v877_v42 = vpop.f32.mrf.mxu2 }
 0x1be   :  { %v851_v22 = vadd.f32 %v850_v6, %v826_v27 }
 0x1c0   :  { %v878_v26 = vadd.f32 %v877_v42, %v851_v22 }
 0x1c2   :  { %5138 = vmatmul.msk.f32.vlgmr.msrb.gmra.mxu3 %vm68_vm0, %v5270_v28 }
 0x1c3   :  { %5139 = vmatmul.msk.f32.vlgmr.msra.gmra.mxu2 %vm68_vm0, %v5270_v28  ;;  %5142 = vmatpush.msk.msrb.mxu3 %vm54_vm4, %v5232_v23 }
 0x1c5   :  { %v900_v38 = vpop.f32.mrf.mxu3  ;;  %v927_v14 = vpop.f32.mrf.mxu2 }
 0x1c6   :  { %v901_v30 = vadd.f32 %v900_v38, %v878_v26 }
 0x1c8   :  { %v2018_v53 = vsel %vm2016_vm7, %v901_v30, 0 }
 0x1c9   :  { %v5696_v63 = vand.u32 4294901760, %v2018_v53 }
 0x1ca   :  { %5140 = vmatmul.msk.f32.vlgmr.msra.gmra.mxu3 %vm68_vm0, %v5270_v28 }
 0x1cb   :  { %v2059_v41 = vsub.f32 %v2018_v53, %v5696_v63  ;;  %2145 = vmatmul.f32.vlgmr.msra.gmra.mxu1 %v5696_v63 }
 0x1cd   :  { %v2060_v51 = vand.u32 4294901760, %v2059_v41  ;;  %v958_v56 = vpop.f32.mrf.mxu3  ;;  %v984_v17 = vpop.f32.mrf.mxu2  ;;  %2197 = vmatmul.f32.vlgmr.msrb.gmra.mxu2 %v2059_v41 }
 0x1ce   :  { %v959_v47 = vadd.f32 %v958_v56, %v927_v14 }
 0x1cf   :  { %v2061_v23 = vsub.f32 %v2059_v41, %v2060_v51 }
 0x1d0   :  { %v985_v55 = vadd.f32 %v984_v17, %v959_v47 }
 0x1d1   :  { %v2062_v24 = vand.u32 4294901760, %v2061_v23 }
 0x1d2   :  { %2256 = vmatmul.f32.vlgmr.msrb.gmra.mxu3 %v2060_v51 }
 0x1d3   :  { %2063 = vmatmul.f32.vlgmr.msra.gmra.mxu0 %v2062_v24 }
 0x1d5   :  { %v1009_v16 = vpop.f32.mrf.mxu3  ;;  %v1036_v31 = vpop.f32.mrf.mxu2 }
 0x1d6   :  { %v1010_v13 = vadd.f32 %v1009_v16, %v985_v55 }
 0x1d8   :  { %v1037_v19 = vadd.f32 %v1036_v31, %v1010_v13 }
 0x1dd   :  { %v1059_v20 = vpop.f32.mrf.mxu3  ;;  %v1086_v57 = vpop.f32.mrf.mxu2 }
 0x1de   :  { %v1060_v58 = vadd.f32 %v1059_v20, %v1037_v19 }
 0x1e0   :  { %v2021_v18 = vsel %vm2016_vm7, %v1060_v58, 0 }
 0x1e1   :  { %v5703_v4 = vand.u32 4294901760, %v2021_v18 }
 0x1e3   :  { %v2067_v48 = vsub.f32 %v2021_v18, %v5703_v4  ;;  %2149 = vmatmul.f32.gmra.mxu1 %v5703_v4 }
 0x1e5   :  { %v1117_v2 = vpop.f32.mrf.mxu3  ;;  %v1143_v5 = vpop.f32.mrf.mxu2  ;;  %2202 = vmatmul.f32.gmra.mxu2 %v2067_v48  ;;  %v2068_v60 = vand.u32 4294901760, %v2067_v48 }
 0x1e6   :  { %v1118_v50 = vadd.f32 %v1117_v2, %v1086_v57 }
 0x1e7   :  { %2262 = vmatmul.f32.gmra.mxu3 %v2068_v60  ;;  %v2069_v9 = vsub.f32 %v2067_v48, %v2068_v60 }
 0x1e8   :  { %v1144_v11 = vadd.f32 %v1143_v5, %v1118_v50 }
 0x1e9   :  { %v2070_v52 = vand.u32 4294901760, %v2069_v9 }
 0x1eb   :  { %2071 = vmatmul.f32.gmra.mxu0 %v2070_v52 }
 0x1ed   :  { %v1168_v49 = vpop.f32.mrf.mxu3  ;;  %v1195_v45 = vpop.f32.mrf.mxu2 }
 0x1ee   :  { %v1169_v21 = vadd.f32 %v1168_v49, %v1144_v11 }
 0x1f0   :  { %v1196_v36 = vadd.f32 %v1195_v45, %v1169_v21 }
 0x1f5   :  { %v1218_v37 = vpop.f32.mrf.mxu3  ;;  %v1245_v61 = vpop.f32.mrf.mxu2 }
 0x1f6   :  { %v1219_v35 = vadd.f32 %v1218_v37, %v1196_v36 }
 0x1f8   :  { %v2024_v3 = vsel %vm2016_vm7, %v1219_v35, 0 }
 0x1f9   :  { %v5708_v46 = vand.u32 4294901760, %v2024_v3  ;;  %v1645_v55 = vpop.f32.mrf.mxu1 }
 0x1fb   :  { %2153 = vmatmul.f32.gmra.mxu1 %v5708_v46  ;;  %v2075_v40 = vsub.f32 %v2024_v3, %v5708_v46  ;;  %v1620_v24 = vpop.f32.mrf.mxu0 }
 0x1fd   :  { %v1276_v7 = vpop.f32.mrf.mxu3  ;;  %v1302_v59 = vpop.f32.mrf.mxu2  ;;  %2207 = vmatmul.f32.gmra.mxu2 %v2075_v40  ;;  %v2076_v10 = vand.u32 4294901760, %v2075_v40 }
 0x1fe   :  { %v1277_v29 = vadd.f32 %v1276_v7, %v1245_v61 }
 0x1ff   :  { %2268 = vmatmul.f32.gmra.mxu3 %v2076_v10  ;;  %v2077_v39 = vsub.f32 %v2075_v40, %v2076_v10 }
 0x200   :  { %v1303_v43 = vadd.f32 %v1302_v59, %v1277_v29 }
 0x201   :  { %v2078_v62 = vand.u32 4294901760, %v2077_v39 }
 0x203   :  { %2079 = vmatmul.f32.gmra.mxu0 %v2078_v62 }
 0x205   :  { %v1327_v8 = vpop.f32.mrf.mxu3  ;;  %v1354_v34 = vpop.f32.mrf.mxu2 }
 0x206   :  { %v1328_v32 = vadd.f32 %v1327_v8, %v1303_v43 }
 0x208   :  { %v1355_v33 = vadd.f32 %v1354_v34, %v1328_v32 }
 0x20c   :  { %v1722_v48 = vpop.f32.mrf.mxu0 }
 0x20d   :  { %v1377_v15 = vpop.f32.mrf.mxu3  ;;  %v1404_v44 = vpop.f32.mrf.mxu2 }
 0x20e   :  { %v1378_v1 = vadd.f32 %v1377_v15, %v1355_v33 }
 0x210   :  { %v2027_v0 = vsel %vm2016_vm7, %v1378_v1, 0 }
 0x211   :  { %v5713_v12 = vand.u32 4294901760, %v2027_v0 }
 0x213   :  { %v2083_v54 = vsub.f32 %v2027_v0, %v5713_v12  ;;  %2157 = vmatmul.f32.gmra.mxu1 %v5713_v12 }
 0x214   :  { %v1753_v52 = vpop.f32.mrf.mxu1  ;;  %v1831_v37 = vpop.f32.mrf.mxu0 }
 0x215   :  { %v1435_v6 = vpop.f32.mrf.mxu3  ;;  %v1461_v42 = vpop.f32.mrf.mxu2  ;;  %v2084_v27 = vand.u32 4294901760, %v2083_v54  ;;  %2212 = vmatmul.f32.gmra.mxu2 %v2083_v54  ;;  %v1754_v11 = vadd.f32 %v1753_v52, %v1722_v48 }
 0x216   :  { %v1436_v38 = vadd.f32 %v1435_v6, %v1404_v44 }
 0x217   :  { %v2085_v22 = vsub.f32 %v2083_v54, %v2084_v27  ;;  %2274 = vmatmul.f32.gmra.mxu3 %v2084_v27 }
 0x218   :  { %v1462_v30 = vadd.f32 %v1461_v42, %v1436_v38 }
 0x219   :  { %v2086_v26 = vand.u32 4294901760, %v2085_v22 }
 0x21b   :  { %2087 = vmatmul.f32.gmra.mxu0 %v2086_v26 }
 0x21c   :  { %v1854_v7 = vpop.f32.mrf.mxu1  ;;  %v1938_v32 = vpop.f32.mrf.mxu0 }
 0x21d   :  { %v1486_v14 = vpop.f32.mrf.mxu3 }
 0x21e   :  { %v1513_v53 = vpop.f32.mrf.mxu2  ;;  %v1487_v41 = vadd.f32 %v1486_v14, %v1462_v30 }
 0x220   :  { %v1514_v51 = vadd.f32 %v1513_v53, %v1487_v41 }
 0x224   :  { %v1963_v1 = vpop.f32.mrf.mxu1 }
 0x225   :  { %v1536_v56 = vpop.f32.mrf.mxu3 }
 0x226   :  { %v1537_v17 = vadd.f32 %v1536_v56, %v1514_v51  ;;  %v1563_v23 = vpop.f32.mrf.mxu2 }
 0x228   :  { %v2030_v47 = vsel %vm2016_vm7, %v1537_v17, 0 }
 0x229   :  { %v5718_v16 = vand.u32 4294901760, %v2030_v47 }
 0x22b   :  { %v2091_v31 = vsub.f32 %v2030_v47, %v5718_v16  ;;  %2161 = vmatmul.f32.gmra.mxu1 %v5718_v16 }
 0x22d   :  { %v1594_v13 = vpop.f32.mrf.mxu3  ;;  %v2092_v19 = vand.u32 4294901760, %v2091_v31  ;;  %2217 = vmatmul.f32.gmra.mxu2 %v2091_v31 }
 0x22e   :  { %v1595_v20 = vadd.f32 %v1594_v13, %v1563_v23  ;;  %v1672_v57 = vpop.f32.mrf.mxu2 }
 0x22f   :  { %v2093_v58 = vsub.f32 %v2091_v31, %v2092_v19  ;;  %2280 = vmatmul.f32.gmra.mxu3 %v2092_v19 }
 0x230   :  { %v1621_v18 = vadd.f32 %v1620_v24, %v1595_v20 }
 0x231   :  { %v2094_v2 = vand.u32 4294901760, %v2093_v58  ;;  %v2404_v58 = vsel %vm2016_vm7, %v5270_v28, 0 }
 0x232   :  { %v1646_v5 = vadd.f32 %v1645_v55, %v1621_v18 }
 0x233   :  { %2095 = vmatmul.f32.gmra.mxu0 %v2094_v2 }
 0x234   :  { %v1673_v60 = vadd.f32 %v1672_v57, %v1646_v5  ;;  %v5753_v5 = vsub.f32 %v2404_v58, %v2404_v58 }
 0x235   :  { %v1695_v9 = vpop.f32.mrf.mxu3 }
 0x236   :  { %v1696_v50 = vadd.f32 %v1695_v9, %v1673_v60  ;;  %v1779_v49 = vpop.f32.mrf.mxu2 }
 0x237   :  { %v1780_v61 = vadd.f32 %v1779_v49, %v1754_v11 }
 0x238   :  { %v2033_v45 = vsel %vm2016_vm7, %v1696_v50, 0  ;;  %v5756_v50 = vand.u32 4294901760, %v5753_v5 }
 0x239   :  { %v2098_v21 = vand.u32 4294901760, %v2033_v45 }
 0x23b   :  { %v2099_v36 = vsub.f32 %v2033_v45, %v2098_v21  ;;  %2165 = vmatmul.f32.gmra.mxu1 %v2098_v21 }
 0x23d   :  { %v1804_v35 = vpop.f32.mrf.mxu3  ;;  %v2100_v3 = vand.u32 4294901760, %v2099_v36  ;;  %2222 = vmatmul.f32.gmra.mxu2 %v2099_v36 }
 0x23e   :  { %v1805_v40 = vadd.f32 %v1804_v35, %v1780_v61  ;;  %v1881_v39 = vpop.f32.mrf.mxu2 }
 0x23f   :  { %v2101_v59 = vsub.f32 %v2099_v36, %v2100_v3  ;;  %2286 = vmatmul.f32.gmra.mxu3 %v2100_v3  ;;  %v2426_v36 = vsub.f32 %v5753_v5, %v5756_v50 }
 0x240   :  { %v1832_v10 = vadd.f32 %v1831_v37, %v1805_v40 }
 0x241   :  { %v2102_v62 = vand.u32 4294901760, %v2101_v59  ;;  %v5760_v40 = vand.u32 4294901760, %v2426_v36 }
 0x242   :  { %v1855_v29 = vadd.f32 %v1854_v7, %v1832_v10 }
 0x243   :  { %2103 = vmatmul.f32.gmra.mxu0 %v2102_v62 }
 0x244   :  { %v2036_v8 = vsel %vm2016_vm7, %v1855_v29, 0 }
 0x245   :  { %v2106_v34 = vand.u32 4294901760, %v2036_v8  ;;  %v1912_v43 = vpop.f32.mrf.mxu3 }
 0x246   :  { %v1913_v33 = vadd.f32 %v1912_v43, %v1881_v39  ;;  %v1990_v6 = vpop.f32.mrf.mxu2 }
 0x247   :  { %v2107_v15 = vsub.f32 %v2036_v8, %v2106_v34  ;;  %2169 = vmatmul.f32.gmra.mxu1 %v2106_v34 }
 0x248   :  { %v1939_v44 = vadd.f32 %v1938_v32, %v1913_v33 }
 0x249   :  { %v2108_v0 = vand.u32 4294901760, %v2107_v15  ;;  %2227 = vmatmul.f32.gmra.mxu2 %v2107_v15 }
 0x24a   :  { %v1964_v54 = vadd.f32 %v1963_v1, %v1939_v44 }
 0x24b   :  { %v2109_v42 = vsub.f32 %v2107_v15, %v2108_v0  ;;  %2292 = vmatmul.f32.gmra.mxu3 %v2108_v0 }
 0x24c   :  { %v1991_v27 = vadd.f32 %v1990_v6, %v1964_v54 }
 0x24d   :  { %v2013_v22 = vpop.f32.mrf.mxu3  ;;  %v2110_v26 = vand.u32 4294901760, %v2109_v42 }
 0x24e   :  { %v2014_v38 = vadd.f32 %v2013_v22, %v1991_v27 }
 0x24f   :  { %2111 = vmatmul.f32.gmra.mxu0 %v2110_v26 }
 0x250   :  { %v2039_v14 = vsel %vm2016_vm7, %v2014_v38, 0  ;;  %v2198_v60 = vpop.f32.mrf.mxu2 }
 0x251   :  { %v2114_v30 = vand.u32 4294901760, %v2039_v14 }
 0x253   :  { %v2115_v53 = vsub.f32 %v2039_v14, %v2114_v30  ;;  %2173 = vmatmul.f32.gmra.mxu1 %v2114_v30 }
 0x255   :  { %v2116_v41 = vand.u32 4294901760, %v2115_v53  ;;  %2232 = vmatmul.f32.gmra.mxu2 %v2115_v53  ;;  %v2257_v52 = vpop.f32.mrf.mxu3 }
 0x257   :  { %v2117_v51 = vsub.f32 %v2115_v53, %v2116_v41  ;;  %2298 = vmatmul.f32.gmra.mxu3 %v2116_v41 }
 0x259   :  { %v2118_v56 = vand.u32 4294901760, %v2117_v51 }
 0x25b   :  { %2119 = vmatmul.f32.gmra.mxu0 %v2118_v56  ;;  %2372 = vmatmul.f32.vlgmr.msrb.gmra.mxu1 %v5696_v63 }
 0x263   :  { %2322 = vmatmul.f32.vlgmr.msrb.gmra.mxu0 %v5696_v63  ;;  %2376 = vmatmul.f32.gmra.mxu1 %v5703_v4  ;;  %v2146_v63 = vpop.f32.mrf.mxu1 }
 0x268   :  { %v2203_v61 = vpop.f32.mrf.mxu2 }
 0x26a   :  { %v2263_v59 = vpop.f32.mrf.mxu3 }
 0x26b   :  { %2326 = vmatmul.f32.gmra.mxu0 %v5703_v4  ;;  %2380 = vmatmul.f32.gmra.mxu1 %v5708_v46  ;;  %v2064_v4 = vpop.f32.mrf.mxu0  ;;  %v2150_v17 = vpop.f32.mrf.mxu1 }
 0x26c   :  { %v2147_v18 = vadd.f32 %v2146_v63, %v2064_v4 }
 0x26e   :  { %v2199_v9 = vadd.f32 %v2198_v60, %v2147_v18 }
 0x270   :  { %v2258_v49 = vadd.f32 %v2257_v52, %v2199_v9 }
 0x273   :  { %2330 = vmatmul.f32.gmra.mxu0 %v5708_v46  ;;  %2384 = vmatmul.f32.gmra.mxu1 %v5713_v12  ;;  %v2072_v23 = vpop.f32.mrf.mxu0 }
 0x274   :  { %v2151_v45 = vadd.f32 %v2150_v17, %v2072_v23 }
 0x276   :  { %v2204_v35 = vadd.f32 %v2203_v61, %v2151_v45 }
 0x278   :  { %v2154_v24 = vpop.f32.mrf.mxu1  ;;  %v2264_v10 = vadd.f32 %v2263_v59, %v2204_v35 }
 0x27b   :  { %2334 = vmatmul.f32.gmra.mxu0 %v5713_v12  ;;  %2388 = vmatmul.f32.gmra.mxu1 %v5718_v16 }
 0x280   :  { %v2080_v46 = vpop.f32.mrf.mxu0  ;;  %v2208_v32 = vpop.f32.mrf.mxu2 }
 0x281   :  { %v2155_v39 = vadd.f32 %v2154_v24, %v2080_v46 }
 0x282   :  { %v2269_v54 = vpop.f32.mrf.mxu3 }
 0x283   :  { %2338 = vmatmul.f32.gmra.mxu0 %v5718_v16  ;;  %2392 = vmatmul.f32.gmra.mxu1 %v2098_v21  ;;  %v2209_v33 = vadd.f32 %v2208_v32, %v2155_v39 }
 0x285   :  { %v2270_v6 = vadd.f32 %v2269_v54, %v2209_v33 }
 0x28b   :  { %2342 = vmatmul.f32.gmra.mxu0 %v2098_v21  ;;  %2396 = vmatmul.f32.gmra.mxu1 %v2106_v34 }
 0x290   :  { %v2158_v47 = vpop.f32.mrf.mxu1 }
 0x293   :  { %2346 = vmatmul.f32.gmra.mxu0 %v2106_v34  ;;  %2400 = vmatmul.f32.gmra.mxu1 %v2114_v30 }
 0x298   :  { %v2088_v31 = vpop.f32.mrf.mxu0  ;;  %v2213_v14 = vpop.f32.mrf.mxu2 }
 0x299   :  { %v2159_v42 = vadd.f32 %v2158_v47, %v2088_v31 }
 0x29a   :  { %v2275_v4 = vpop.f32.mrf.mxu3 }
 0x29b   :  { %2350 = vmatmul.f32.gmra.mxu0 %v2114_v30  ;;  %v2214_v53 = vadd.f32 %v2213_v14, %v2159_v42 }
 0x29d   :  { %v2276_v23 = vadd.f32 %v2275_v4, %v2214_v53 }
 0x2a8   :  { %v5735_v55 = vpop.f32.mrf.mxu1 }
 0x2b0   :  { %v5737_v12 = vpop.f32.mrf.mxu0  ;;  %v2218_v58 = vpop.f32.mrf.mxu2 }
 0x2b1   :  { %v2163_v17 = vadd.f32 %v5735_v55, %v5737_v12 }
 0x2b2   :  { %v2281_v60 = vpop.f32.mrf.mxu3 }
 0x2b3   :  { %v2219_v55 = vadd.f32 %v2218_v58, %v2163_v17 }
 0x2b5   :  { %v2282_v52 = vadd.f32 %v2281_v60, %v2219_v55 }
 0x2b8   :  { %v5739_v13 = vpop.f32.mrf.mxu1 }
 0x2c0   :  { %v5741_v16 = vpop.f32.mrf.mxu0 }
 0x2c1   :  { %v2167_v9 = vadd.f32 %v5739_v13, %v5741_v16 }
 0x2c4   :  { %v5743_v19 = vpop.f32.mrf.mxu1 }
 0x2cc   :  { %v5745_v20 = vpop.f32.mrf.mxu0 }
 0x2cd   :  { %v2171_v35 = vadd.f32 %v5743_v19, %v5745_v20 }
 0x2d0   :  { %v5747_v57 = vpop.f32.mrf.mxu1 }
 0x2d8   :  { %v5751_v48 = vpop.f32.mrf.mxu0  ;;  %v2373_v2 = vpop.f32.mrf.mxu1 }
 0x2d9   :  { %v2175_v33 = vadd.f32 %v5747_v57, %v5751_v48 }
 0x2e0   :  { %v2323_v11 = vpop.f32.mrf.mxu0  ;;  %v2377_v21 = vpop.f32.mrf.mxu1 }
 0x2e1   :  { %v2324_v37 = vadd.f32 %v2323_v11, %v2258_v49 }
 0x2e3   :  { %v2374_v3 = vadd.f32 %v2373_v2, %v2324_v37  ;;  %v2287_v37 = vpop.f32.mrf.mxu3 }
 0x2e5   :  { %v2421_v7 = vand.u32 4294901760, %v2374_v3 }
 0x2e7   :  { %v2448_v62 = vsub.f32 %v2374_v3, %v2421_v7  ;;  %2422 = vmatpush.msra.mxu2 %v2421_v7 }
 0x2e8   :  { %v2327_v29 = vpop.f32.mrf.mxu0  ;;  %v2381_v8 = vpop.f32.mrf.mxu1  ;;  %2428 = vmatmul.f32.vlgmr.msra.gmra.mxu2 %v5760_v40 }
 0x2e9   :  { %v2328_v34 = vadd.f32 %v2327_v29, %v2264_v10  ;;  %2475 = vmatpush.msrb.mxu2 %v2448_v62  ;;  %v2449_v43 = vand.u32 4294901760, %v2448_v62 }
 0x2eb   :  { %v2378_v15 = vadd.f32 %v2377_v21, %v2328_v34  ;;  %2524 = vmatpush.msra.mxu2 %v2449_v43  ;;  %v2450_v44 = vsub.f32 %v2448_v62, %v2449_v43  ;;  %v2223_v21 = vpop.f32.mrf.mxu2  ;;  %v2293_v32 = vpop.f32.mrf.mxu3 }
 0x2ec   :  { %v2224_v13 = vadd.f32 %v2223_v21, %v2167_v9 }
 0x2ed   :  { %v5763_v1 = vand.u32 4294901760, %v2378_v15  ;;  %v2451_v0 = vand.u32 4294901760, %v2450_v44 }
 0x2ee   :  { %v2288_v3 = vadd.f32 %v2287_v37, %v2224_v13 }
 0x2ef   :  { %v2594_v27 = vsub.f32 %v2378_v15, %v5763_v1  ;;  %2452 = vmatpush.msra.mxu3 %v2451_v0 }
 0x2f0   :  { %v2331_v22 = vpop.f32.mrf.mxu0  ;;  %5144 = vmatmul.msk.f32.vlgmr.msra.gmra.mxu3 %vm2016_vm7, %v5270_v28  ;;  %2478 = vmatmul.f32.vlgmr.msrb.gmra.mxu2 %v5753_v5  ;;  %v2385_v30 = vpop.f32.mrf.mxu1 }
 0x2f1   :  { %v2332_v26 = vadd.f32 %v2331_v22, %v2270_v6  ;;  %2498 = vmatpush.msrb.mxu3 %v2421_v7  ;;  %2568 = vmatpush.msrb.mxu2 %v5763_v1  ;;  %v2595_v38 = vand.u32 4294901760, %v2594_v27 }
 0x2f3   :  { %2546 = vmatpush.msra.mxu3 %v2421_v7  ;;  %v2382_v41 = vadd.f32 %v2381_v8, %v2332_v26  ;;  %v2596_v51 = vsub.f32 %v2594_v27, %v2595_v38  ;;  %v2228_v19 = vpop.f32.mrf.mxu2  ;;  %v2299_v22 = vpop.f32.mrf.mxu3 }
 0x2f4   :  { %v2229_v20 = vadd.f32 %v2228_v19, %v2171_v35 }
 0x2f5   :  { %v5770_v56 = vand.u32 4294901760, %v2382_v41  ;;  %v2597_v63 = vand.u32 4294901760, %v2596_v51 }
 0x2f6   :  { %v2294_v15 = vadd.f32 %v2293_v32, %v2229_v20 }
 0x2f7   :  { %v5775_v24 = vsub.f32 %v2382_v41, %v5770_v56  ;;  %2838 = vmatpush.msra.mxu1 %v5770_v56 }
 0x2f8   :  { %v2335_v46 = vpop.f32.mrf.mxu0  ;;  %2502 = vmatmul.f32.vlgmr.msrb.gmra.mxu3 %v5756_v50  ;;  %5145 = vmatmul.msk.f32.vlgmr.msra.gmra.mxu2 %vm2016_vm7, %v5270_v28  ;;  %v2389_v18 = vpop.f32.mrf.mxu1 }
 0x2f9   :  { %v2336_v47 = vadd.f32 %v2335_v46, %v2276_v23  ;;  %2598 = vmatpush.msrb.mxu3 %v2597_v63  ;;  %2621 = vmatpush.msra.mxu2 %v2594_v27  ;;  %v2741_v31 = vand.u32 4294901760, %v5775_v24 }
 0x2fa   :  { %5152 = vmatmul.msk.f32.vlgmr.msra.gmra.mxu1 %vm2016_vm7, %v5270_v28 }
 0x2fb   :  { %v2386_v12 = vadd.f32 %v2385_v30, %v2336_v47  ;;  %2816 = vmatpush.msra.mxu0 %v2741_v31  ;;  %v2742_v8 = vsub.f32 %v5775_v24, %v2741_v31  ;;  %v2233_v42 = vpop.f32.mrf.mxu2 }
 0x2fc   :  { %5151 = vmatmul.msk.f32.vlgmr.msra.gmra.mxu0 %vm2016_vm7, %v5270_v28  ;;  %v2234_v57 = vadd.f32 %v2233_v42, %v2175_v33 }
 0x2fd   :  { %v5786_v2 = vand.u32 4294901760, %v2386_v12 }
 0x2fe   :  { %v2300_v26 = vadd.f32 %v2299_v22, %v2234_v57 }
 0x2ff   :  { %v5791_v49 = vsub.f32 %v2386_v12, %v5786_v2  ;;  %2936 = vmatpush.msrb.mxu1 %v5786_v2 }
 0x300   :  { %v2339_v45 = vpop.f32.mrf.mxu0  ;;  %5146 = vmatmul.msk.f32.vlgmr.msra.gmra.mxu3 %vm2016_vm7, %v5270_v28  ;;  %2574 = vmatmul.f32.vlgmr.msrb.gmra.mxu2 %v5760_v40  ;;  %v2393_v61 = vpop.f32.mrf.mxu1 }
 0x301   :  { %v2340_v11 = vadd.f32 %v2339_v45, %v2282_v52  ;;  %2644 = vmatpush.msra.mxu3 %v5763_v1  ;;  %2670 = vmatpush.msrb.mxu2 %v2595_v38  ;;  %v2887_v14 = vand.u32 4294901760, %v5791_v49 }
 0x302   :  { %2913 = vmatpush.msrb.mxu0 %v5791_v49  ;;  %2940 = vmatmul.f32.vlgmr.msrb.gmra.mxu1 %v5756_v50 }
 0x303   :  { %v2390_v16 = vadd.f32 %v2389_v18, %v2340_v11  ;;  %v2888_v17 = vsub.f32 %v5791_v49, %v2887_v14  ;;  %v3612_v11 = vsel %vm3610_vm8, %v5264_v25, 0 }
 0x304   :  { %2916 = vmatmul.f32.vlgmr.msrb.gmra.mxu0 %v5753_v5 }
 0x305   :  { %v5801_v36 = vand.u32 4294901760, %v2390_v16  ;;  %v2889_v46 = vand.u32 4294901760, %v2888_v17 }
 0x307   :  { %v5806_v7 = vsub.f32 %v2390_v16, %v5801_v36  ;;  %3006 = vmatpush.msra.mxu0 %v5801_v36  ;;  %v3680_v16 = vsub.f32 %v3612_v11, %v3612_v11 }
 0x308   :  { %v2343_v59 = vpop.f32.mrf.mxu0  ;;  %5147 = vmatmul.msk.f32.vlgmr.msrb.gmra.mxu3 %vm2016_vm7, %v5270_v28  ;;  %2624 = vmatmul.f32.vlgmr.msra.gmra.mxu2 %v5753_v5  ;;  %v2397_v0 = vpop.f32.mrf.mxu1 }
 0x309   :  { %v2344_v10 = vadd.f32 %v2343_v59, %v2288_v3  ;;  %2692 = vmatpush.msrb.mxu3 %v5763_v1  ;;  %2714 = vmatpush.msra.mxu2 %v5770_v56  ;;  %v3033_v39 = vand.u32 4294901760, %v5806_v7  ;;  %v2743_v1 = vand.u32 4294901760, %v2742_v8  ;;  %v3681_v37 = vand.u32 4294901760, %v3680_v16 }
 0x30b   :  { %v2394_v62 = vadd.f32 %v2393_v61, %v2344_v10  ;;  %3108 = vmatpush.msrb.mxu0 %v3033_v39  ;;  %v3034_v29 = vsub.f32 %v5806_v7, %v3033_v39  ;;  %v3682_v61 = vsub.f32 %v3680_v16, %v3681_v37 }
 0x30c   :  { %3012 = vmatmul.f32.vlgmr.msra.gmra.mxu0 %v5760_v40 }
 0x30d   :  { %v5818_v34 = vand.u32 4294901760, %v2394_v62  ;;  %v3035_v43 = vand.u32 4294901760, %v3034_v29  ;;  %v3683_v35 = vand.u32 4294901760, %v3682_v61 }
 0x30f   :  { %v5823_v44 = vsub.f32 %v2394_v62, %v5818_v34  ;;  %3036 = vmatpush.msra.mxu1 %v3035_v43 }
 0x310   :  { %v2347_v54 = vpop.f32.mrf.mxu0  ;;  %2648 = vmatmul.f32.vlgmr.msra.gmra.mxu3 %v5756_v50  ;;  %5148 = vmatmul.msk.f32.vlgmr.msrb.gmra.mxu2 %vm2016_vm7, %v5270_v28  ;;  %v2401_v51 = vpop.f32.mrf.mxu1 }
 0x311   :  { %v2348_v6 = vadd.f32 %v2347_v54, %v2294_v15  ;;  %2744 = vmatpush.msra.mxu3 %v2743_v1  ;;  %2767 = vmatpush.msrb.mxu2 %v5775_v24  ;;  %v3179_v47 = vand.u32 4294901760, %v5823_v44 }
 0x312   :  { %5156 = vmatmul.msk.f32.vlgmr.msra.gmra.mxu1 %vm2016_vm7, %v5270_v28  ;;  %3205 = vmatpush.msra.mxu0 %v5823_v44 }
 0x313   :  { %v2398_v48 = vadd.f32 %v2397_v0, %v2348_v6  ;;  %3130 = vmatpush.msrb.mxu1 %v5801_v36  ;;  %v3180_v31 = vsub.f32 %v5823_v44, %v3179_v47 }
 0x314   :  { %5157 = vmatmul.msk.f32.vlgmr.msrb.gmra.mxu0 %vm2016_vm7, %v5270_v28 }
 0x315   :  { %3228 = vmatpush.msra.mxu1 %v5818_v34  ;;  %v3297_v27 = vand.u32 4294901760, %v2398_v48  ;;  %v3181_v58 = vand.u32 4294901760, %v3180_v31 }
 0x317   :  { %v3324_v38 = vsub.f32 %v2398_v48, %v3297_v27  ;;  %3298 = vmatpush.msrb.mxu0 %v3297_v27 }
 0x318   :  { %v2351_v30 = vpop.f32.mrf.mxu0  ;;  %5149 = vmatmul.msk.f32.vlgmr.msrb.gmra.mxu3 %vm2016_vm7, %v5270_v28  ;;  %2720 = vmatmul.f32.vlgmr.msra.gmra.mxu2 %v5760_v40 }
 0x319   :  { %v2352_v53 = vadd.f32 %v2351_v30, %v2300_v26  ;;  %2790 = vmatpush.msrb.mxu3 %v5770_v56  ;;  %2860 = vmatpush.msra.mxu2 %v5786_v2  ;;  %v3325_v41 = vand.u32 4294901760, %v3324_v38 }
 0x31a   :  { %5158 = vmatmul.msk.f32.vlgmr.msrb.gmra.mxu1 %vm2016_vm7, %v5270_v28 }
 0x31b   :  { %v2402_v63 = vadd.f32 %v2401_v51, %v2352_v53  ;;  %v3326_v4 = vsub.f32 %v3324_v38, %v3325_v41 }
 0x31c   :  { %3208 = vmatmul.f32.vlgmr.msra.gmra.mxu0 %v5753_v5 }
 0x31d   :  { %3400 = vmatpush.msra.mxu0 %v3325_v41  ;;  %v3327_v23 = vand.u32 4294901760, %v3326_v4  ;;  %v3443_v24 = vand.u32 4294901760, %v2402_v63 }
 0x31f   :  { %3328 = vmatpush.msrb.mxu1 %v3327_v23  ;;  %v3470_v56 = vsub.f32 %v2402_v63, %v3443_v24 }
 0x320   :  { %5150 = vmatmul.msk.f32.vlgmr.msra.gmra.mxu3 %vm2016_vm7, %v5270_v28  ;;  %2770 = vmatmul.f32.vlgmr.msrb.gmra.mxu2 %v5753_v5 }
 0x321   :  { %2890 = vmatpush.msra.mxu3 %v2889_v46  ;;  %2962 = vmatpush.msrb.mxu2 %v2887_v14  ;;  %v3471_v55 = vand.u32 4294901760, %v3470_v56 }
 0x322   :  { %3232 = vmatmul.f32.vlgmr.msra.gmra.mxu1 %v5756_v50 }
 0x323   :  { %3422 = vmatpush.msra.mxu1 %v3297_v27  ;;  %v3472_v12 = vsub.f32 %v3470_v56, %v3471_v55 }
 0x324   :  { %3304 = vmatmul.f32.vlgmr.msrb.gmra.mxu0 %v5760_v40 }
 0x325   :  { %3497 = vmatpush.msrb.mxu0 %v3470_v56  ;;  %v3473_v18 = vand.u32 4294901760, %v3472_v12 }
 0x328   :  { %2794 = vmatmul.f32.vlgmr.msrb.gmra.mxu3 %v5756_v50  ;;  %2866 = vmatmul.f32.vlgmr.msra.gmra.mxu2 %v5760_v40 }
 0x329   :  { %2984 = vmatpush.msrb.mxu3 %v5786_v2  ;;  %3059 = vmatpush.msra.mxu2 %v5806_v7 }
 0x32a   :  { %5162 = vmatmul.msk.f32.vlgmr.msrb.gmra.mxu1 %vm2016_vm7, %v5270_v28 }
 0x32b   :  { %3520 = vmatpush.msrb.mxu1 %v3443_v24 }
 0x32c   :  { %5163 = vmatmul.msk.f32.vlgmr.msra.gmra.mxu0 %vm2016_vm7, %v5270_v28 }
 0x32d   :  { %5168 = vmatpush.msk.msra.mxu0 %vm3610_vm8, %v5264_v25 }
 0x330   :  { %5153 = vmatmul.msk.f32.vlgmr.msra.gmra.mxu3 %vm2016_vm7, %v5270_v28  ;;  %5154 = vmatmul.msk.f32.vlgmr.msrb.gmra.mxu2 %vm2016_vm7, %v5270_v28 }
 0x331   :  { %3082 = vmatpush.msra.mxu3 %v5801_v36  ;;  %3152 = vmatpush.msrb.mxu2 %v5818_v34 }
 0x332   :  { %5164 = vmatmul.msk.f32.vlgmr.msra.gmra.mxu1 %vm2016_vm7, %v5270_v28 }
 0x333   :  { %3684 = vmatpush.msra.mxu1 %v3683_v35 }
 0x334   :  { %3500 = vmatmul.f32.vlgmr.msrb.gmra.mxu0 %v5753_v5 }
 0x335   :  { %3801 = vmatpush.msrb.mxu0 %v3681_v37 }
 0x338   :  { %5155 = vmatmul.msk.f32.vlgmr.msrb.gmra.mxu3 %vm2016_vm7, %v5270_v28  ;;  %3062 = vmatmul.f32.vlgmr.msra.gmra.mxu2 %v5753_v5 }
 0x339   :  { %3182 = vmatpush.msrb.mxu3 %v3181_v58  ;;  %3254 = vmatpush.msra.mxu2 %v3179_v47 }
 0x33a   :  { %3524 = vmatmul.f32.vlgmr.msrb.gmra.mxu1 %v5756_v50 }
 0x33b   :  { %5170 = vmatpush.msk.msrb.mxu1 %vm3610_vm8, %v5264_v25 }
 0x340   :  { %3086 = vmatmul.f32.vlgmr.msra.gmra.mxu3 %v5756_v50  ;;  %3158 = vmatmul.f32.vlgmr.msrb.gmra.mxu2 %v5760_v40 }
 0x341   :  { %3276 = vmatpush.msra.mxu3 %v5818_v34  ;;  %3351 = vmatpush.msrb.mxu2 %v3324_v38 }
 0x348   :  { %5159 = vmatmul.msk.f32.vlgmr.msrb.gmra.mxu3 %vm2016_vm7, %v5270_v28  ;;  %5160 = vmatmul.msk.f32.vlgmr.msra.gmra.mxu2 %vm2016_vm7, %v5270_v28 }
 0x349   :  { %3374 = vmatpush.msrb.mxu3 %v3297_v27  ;;  %3444 = vmatpush.msra.mxu2 %v3443_v24 }
 0x350   :  { %5161 = vmatmul.msk.f32.vlgmr.msra.gmra.mxu3 %vm2016_vm7, %v5270_v28  ;;  %3354 = vmatmul.f32.vlgmr.msrb.gmra.mxu2 %v5753_v5 }
 0x351   :  { %3474 = vmatpush.msra.mxu3 %v3473_v18  ;;  %3546 = vmatpush.msrb.mxu2 %v3471_v55 }
 0x358   :  { %3378 = vmatmul.f32.vlgmr.msrb.gmra.mxu3 %v5756_v50  ;;  %3450 = vmatmul.f32.vlgmr.msra.gmra.mxu2 %v5760_v40 }
 0x359   :  { %3568 = vmatpush.msrb.mxu3 %v3443_v24  ;;  %3719 = vmatpush.msra.mxu2 %v3680_v16 }
 0x360   :  { %5165 = vmatmul.msk.f32.vlgmr.msra.gmra.mxu3 %vm2016_vm7, %v5270_v28  ;;  %5166 = vmatmul.msk.f32.vlgmr.msrb.gmra.mxu2 %vm2016_vm7, %v5270_v28 }
 0x361   :  { %5169 = vmatpush.msk.msra.mxu3 %vm3610_vm8, %v5264_v25 }
 0x368   :  { %5167 = vmatmul.msk.f32.vlgmr.msrb.gmra.mxu3 %vm2016_vm7, %v5270_v28 }
 0x36b   :  { %v2429_v2 = vpop.f32.mrf.mxu2 }
 0x373   :  { %v2455_v60 = vpop.f32.mrf.mxu3  ;;  %v2479_v9 = vpop.f32.mrf.mxu2 }
 0x374   :  { %v2456_v5 = vadd.f32 %v2455_v60, %v2429_v2 }
 0x376   :  { %v2480_v45 = vadd.f32 %v2479_v9, %v2456_v5 }
 0x377   :  { %v2841_v32 = vpop.f32.mrf.mxu1 }
 0x379   :  { %v2819_v43 = vpop.f32.mrf.mxu0 }
 0x37b   :  { %v2503_v52 = vpop.f32.mrf.mxu3  ;;  %v2527_v49 = vpop.f32.mrf.mxu2 }
 0x37c   :  { %v2504_v50 = vadd.f32 %v2503_v52, %v2480_v45 }
 0x37e   :  { %v2528_v40 = vadd.f32 %v2527_v49, %v2504_v50 }
 0x37f   :  { %v2941_v57 = vpop.f32.mrf.mxu1 }
 0x381   :  { %v2917_v0 = vpop.f32.mrf.mxu0 }
 0x383   :  { %v2549_v21 = vpop.f32.mrf.mxu3  ;;  %v2575_v13 = vpop.f32.mrf.mxu2 }
 0x384   :  { %v2550_v36 = vadd.f32 %v2549_v21, %v2528_v40 }
 0x386   :  { %3582 = vst [vmem:[#allocation1] ss:$2 sm:$0xff] %v2550_v36 }
 0x389   :  { %v3013_v41 = vpop.f32.mrf.mxu0 }
 0x38b   :  { %v2601_v3 = vpop.f32.mrf.mxu3  ;;  %v2625_v7 = vpop.f32.mrf.mxu2 }
 0x38c   :  { %v2602_v59 = vadd.f32 %v2601_v3, %v2575_v13 }
 0x38e   :  { %v2626_v19 = vadd.f32 %v2625_v7, %v2602_v59 }
 0x38f   :  { %v3039_v17 = vpop.f32.mrf.mxu1 }
 0x390   :  { %v3040_v55 = vadd.f32 %v3039_v17, %v3013_v41 }
 0x391   :  { %v3111_v56 = vpop.f32.mrf.mxu0 }
 0x393   :  { %v2649_v10 = vpop.f32.mrf.mxu3  ;;  %v2673_v39 = vpop.f32.mrf.mxu2 }
 0x394   :  { %v2650_v20 = vadd.f32 %v2649_v10, %v2626_v19 }
 0x396   :  { %v2674_v62 = vadd.f32 %v2673_v39, %v2650_v20 }
 0x397   :  { %v3133_v12 = vpop.f32.mrf.mxu1 }
 0x399   :  { %v3209_v5 = vpop.f32.mrf.mxu0 }
 0x39b   :  { %v2695_v29 = vpop.f32.mrf.mxu3  ;;  %v2721_v8 = vpop.f32.mrf.mxu2 }
 0x39c   :  { %v2696_v34 = vadd.f32 %v2695_v29, %v2674_v62 }
 0x39e   :  { %3584 = vst [vmem:[#allocation1 + $0x1] ss:$2 sm:$0xff] %v2696_v34 }
 0x39f   :  { %v3233_v11 = vpop.f32.mrf.mxu1 }
 0x3a1   :  { %v3305_v3 = vpop.f32.mrf.mxu0 }
 0x3a3   :  { %v2747_v33 = vpop.f32.mrf.mxu3  ;;  %v2771_v15 = vpop.f32.mrf.mxu2 }
 0x3a4   :  { %v2748_v1 = vadd.f32 %v2747_v33, %v2721_v8 }
 0x3a5   :  { %v3597_v44 = vld.sshfl [vmem:[#allocation1] sm:$0xff pattern:$0x75316420] }
 0x3a6   :  { %v3602_v25 = vsel %vm3601_vm9, %v3597_v44, 0  ;;  %v2772_v42 = vadd.f32 %v2771_v15, %v2748_v1 }
 0x3a7   :  { %v5901_v54 = vand.u32 4294901760, %v3602_v25  ;;  %v3331_v19 = vpop.f32.mrf.mxu1 }
 0x3a8   :  { %v3332_v29 = vadd.f32 %v3331_v19, %v3305_v3 }
 0x3a9   :  { %3686 = vmatmul.f32.vlgmr.msra.gmra.mxu1 %v5901_v54  ;;  %v3632_v6 = vsub.f32 %v3602_v25, %v5901_v54  ;;  %v3403_v8 = vpop.f32.mrf.mxu0 }
 0x3ab   :  { %v2795_v48 = vpop.f32.mrf.mxu3  ;;  %v2867_v27 = vpop.f32.mrf.mxu2  ;;  %3722 = vmatmul.f32.vlgmr.msra.gmra.mxu2 %v3632_v6  ;;  %v3633_v22 = vand.u32 4294901760, %v3632_v6 }
 0x3ac   :  { %v2796_v26 = vadd.f32 %v2795_v48, %v2772_v42 }
 0x3ad   :  { %3761 = vmatmul.f32.vlgmr.msra.gmra.mxu3 %v3633_v22  ;;  %v3634_v38 = vsub.f32 %v3632_v6, %v3633_v22 }
 0x3ae   :  { %v2820_v14 = vadd.f32 %v2819_v43, %v2796_v26 }
 0x3af   :  { %v3635_v30 = vand.u32 4294901760, %v3634_v38 }
 0x3b0   :  { %v2842_v53 = vadd.f32 %v2841_v32, %v2820_v14  ;;  %v3425_v32 = vpop.f32.mrf.mxu1 }
 0x3b1   :  { %3636 = vmatmul.f32.vlgmr.msra.gmra.mxu0 %v3635_v30  ;;  %v3501_v48 = vpop.f32.mrf.mxu0 }
 0x3b2   :  { %3586 = vst [vmem:[#allocation1 + $0x10] ss:$2 sm:$0xff] %v2842_v53 }
 0x3b3   :  { %v2893_v51 = vpop.f32.mrf.mxu3  ;;  %v2965_v63 = vpop.f32.mrf.mxu2 }
 0x3b4   :  { %v2894_v4 = vadd.f32 %v2893_v51, %v2867_v27 }
 0x3b6   :  { %v2918_v23 = vadd.f32 %v2917_v0, %v2894_v4 }
 0x3b8   :  { %v2942_v24 = vadd.f32 %v2941_v57, %v2918_v23  ;;  %v3525_v26 = vpop.f32.mrf.mxu1 }
 0x3ba   :  { %v2966_v46 = vadd.f32 %v2965_v63, %v2942_v24 }
 0x3bb   :  { %v2987_v47 = vpop.f32.mrf.mxu3  ;;  %v3063_v31 = vpop.f32.mrf.mxu2 }
 0x3bc   :  { %v2988_v58 = vadd.f32 %v2987_v47, %v2966_v46  ;;  %v3064_v18 = vadd.f32 %v3063_v31, %v3040_v55 }
 0x3be   :  { %3588 = vst [vmem:[#allocation1 + $0x11] ss:$2 sm:$0xff] %v2988_v58 }
 0x3c3   :  { %v3087_v2 = vpop.f32.mrf.mxu3  ;;  %v3159_v60 = vpop.f32.mrf.mxu2 }
 0x3c4   :  { %v3088_v9 = vadd.f32 %v3087_v2, %v3064_v18 }
 0x3c5   :  { %v3598_v52 = vld.sshfl [vmem:[#allocation1 + $0x10] sm:$0xff pattern:$0x75316420] }
 0x3c6   :  { %v3112_v49 = vadd.f32 %v3111_v56, %v3088_v9  ;;  %v3604_v45 = vsel %vm3601_vm9, %v3598_v52, 0 }
 0x3c7   :  { %v5906_v50 = vand.u32 4294901760, %v3604_v45 }
 0x3c8   :  { %v3134_v40 = vadd.f32 %v3133_v12, %v3112_v49 }
 0x3c9   :  { %3690 = vmatmul.f32.gmra.mxu1 %v5906_v50  ;;  %v3640_v21 = vsub.f32 %v3604_v45, %v5906_v50 }
 0x3ca   :  { %3590 = vst [vmem:[#allocation1 + $0x20] ss:$2 sm:$0xff] %v3134_v40 }
 0x3cb   :  { %v3185_v13 = vpop.f32.mrf.mxu3  ;;  %v3257_v16 = vpop.f32.mrf.mxu2  ;;  %v3641_v36 = vand.u32 4294901760, %v3640_v21  ;;  %3727 = vmatmul.f32.gmra.mxu2 %v3640_v21 }
 0x3cc   :  { %v3186_v37 = vadd.f32 %v3185_v13, %v3159_v60 }
 0x3cd   :  { %v3642_v61 = vsub.f32 %v3640_v21, %v3641_v36  ;;  %3767 = vmatmul.f32.gmra.mxu3 %v3641_v36 }
 0x3ce   :  { %v3210_v35 = vadd.f32 %v3209_v5, %v3186_v37  ;;  %v3861_v5 = vsel %vm3601_vm9, %v5270_v28, 0 }
 0x3cf   :  { %v3643_v7 = vand.u32 4294901760, %v3642_v61  ;;  %v5922_v49 = vsub.f32 %v3861_v5, %v3861_v5 }
 0x3d0   :  { %v3234_v59 = vadd.f32 %v3233_v11, %v3210_v35 }
 0x3d1   :  { %3644 = vmatmul.f32.gmra.mxu0 %v3643_v7  ;;  %v5925_v40 = vand.u32 4294901760, %v5922_v49 }
 0x3d2   :  { %v3258_v10 = vadd.f32 %v3257_v16, %v3234_v59 }
 0x3d3   :  { %v3279_v39 = vpop.f32.mrf.mxu3  ;;  %v3355_v62 = vpop.f32.mrf.mxu2  ;;  %v3885_v61 = vsub.f32 %v5922_v49, %v5925_v40 }
 0x3d4   :  { %v3280_v20 = vadd.f32 %v3279_v39, %v3258_v10  ;;  %v3356_v34 = vadd.f32 %v3355_v62, %v3332_v29 }
 0x3d5   :  { %v5930_v39 = vand.u32 4294901760, %v3885_v61 }
 0x3d6   :  { %3592 = vst [vmem:[#allocation1 + $0x21] ss:$2 sm:$0xff] %v3280_v20 }
 0x3db   :  { %v3379_v43 = vpop.f32.mrf.mxu3  ;;  %v3451_v15 = vpop.f32.mrf.mxu2 }
 0x3dc   :  { %v3380_v33 = vadd.f32 %v3379_v43, %v3356_v34 }
 0x3dd   :  { %v3599_v44 = vld.sshfl [vmem:[#allocation1 + $0x20] sm:$0xff pattern:$0x75316420] }
 0x3de   :  { %v3404_v1 = vadd.f32 %v3403_v8, %v3380_v33  ;;  %v3606_v0 = vsel %vm3601_vm9, %v3599_v44, 0 }
 0x3df   :  { %v3647_v25 = vand.u32 4294901760, %v3606_v0 }
 0x3e0   :  { %v3426_v6 = vadd.f32 %v3425_v32, %v3404_v1 }
 0x3e1   :  { %3694 = vmatmul.f32.gmra.mxu1 %v3647_v25  ;;  %v3648_v42 = vsub.f32 %v3606_v0, %v3647_v25 }
 0x3e2   :  { %3594 = vst [vmem:[#allocation1 + $0x30] ss:$2 sm:$0xff] %v3426_v6 }
 0x3e3   :  { %v3477_v57 = vpop.f32.mrf.mxu3  ;;  %v3649_v27 = vand.u32 4294901760, %v3648_v42  ;;  %3732 = vmatmul.f32.gmra.mxu2 %v3648_v42  ;;  %v3549_v30 = vpop.f32.mrf.mxu2 }
 0x3e4   :  { %v3478_v22 = vadd.f32 %v3477_v57, %v3451_v15 }
 0x3e5   :  { %v3650_v38 = vsub.f32 %v3648_v42, %v3649_v27  ;;  %3773 = vmatmul.f32.gmra.mxu3 %v3649_v27 }
 0x3e6   :  { %v3502_v14 = vadd.f32 %v3501_v48, %v3478_v22 }
 0x3e7   :  { %v3651_v53 = vand.u32 4294901760, %v3650_v38 }
 0x3e8   :  { %v3526_v41 = vadd.f32 %v3525_v26, %v3502_v14 }
 0x3e9   :  { %3652 = vmatmul.f32.gmra.mxu0 %v3651_v53 }
 0x3ea   :  { %v3550_v51 = vadd.f32 %v3549_v30, %v3526_v41 }
 0x3eb   :  { %v3571_v63 = vpop.f32.mrf.mxu3 }
 0x3ec   :  { %v3572_v4 = vadd.f32 %v3571_v63, %v3550_v51 }
 0x3ee   :  { %3596 = vst [vmem:[#allocation1 + $0x31] ss:$2 sm:$0xff] %v3572_v4 }
 0x3f5   :  { %v3600_v17 = vld.sshfl [vmem:[#allocation1 + $0x30] sm:$0xff pattern:$0x75316420] }
 0x3f6   :  { %v3608_v23 = vsel %vm3601_vm9, %v3600_v17, 0 }
 0x3f7   :  { %v3655_v24 = vand.u32 4294901760, %v3608_v23 }
 0x3f9   :  { %3698 = vmatmul.f32.gmra.mxu1 %v3655_v24  ;;  %v3656_v46 = vsub.f32 %v3608_v23, %v3655_v24 }
 0x3fb   :  { %v3657_v56 = vand.u32 4294901760, %v3656_v46  ;;  %3737 = vmatmul.f32.gmra.mxu2 %v3656_v46 }
 0x3fd   :  { %v3658_v47 = vsub.f32 %v3656_v46, %v3657_v56  ;;  %3779 = vmatmul.f32.gmra.mxu3 %v3657_v56 }
 0x3ff   :  { %v3659_v31 = vand.u32 4294901760, %v3658_v47 }
 0x401   :  { %3660 = vmatmul.f32.gmra.mxu0 %v3659_v31  ;;  %3837 = vmatmul.f32.vlgmr.msrb.gmra.mxu1 %v5901_v54 }
 0x409   :  { %3803 = vmatmul.f32.vlgmr.msrb.gmra.mxu0 %v5901_v54  ;;  %3841 = vmatmul.f32.gmra.mxu1 %v5906_v50 }
 0x411   :  { %3807 = vmatmul.f32.gmra.mxu0 %v5906_v50  ;;  %3845 = vmatmul.f32.gmra.mxu1 %v3647_v25 }
 0x419   :  { %3811 = vmatmul.f32.gmra.mxu0 %v3647_v25  ;;  %3849 = vmatmul.f32.gmra.mxu1 %v3655_v24 }
 0x421   :  { %3815 = vmatmul.f32.gmra.mxu0 %v3655_v24 }
 0x426   :  { %v3687_v58 = vpop.f32.mrf.mxu1 }
 0x42e   :  { %v3637_v55 = vpop.f32.mrf.mxu0  ;;  %v3723_v45 = vpop.f32.mrf.mxu2 }
 0x42f   :  { %v3688_v54 = vadd.f32 %v3687_v58, %v3637_v55 }
 0x430   :  { %v3762_v11 = vpop.f32.mrf.mxu3 }
 0x431   :  { %v3724_v50 = vadd.f32 %v3723_v45, %v3688_v54 }
 0x433   :  { %v3763_v13 = vadd.f32 %v3762_v11, %v3724_v50 }
 0x446   :  { %v3691_v12 = vpop.f32.mrf.mxu1 }
 0x44e   :  { %v3645_v18 = vpop.f32.mrf.mxu0  ;;  %v3728_v35 = vpop.f32.mrf.mxu2 }
 0x44f   :  { %v3692_v16 = vadd.f32 %v3691_v12, %v3645_v18 }
 0x450   :  { %v3768_v20 = vpop.f32.mrf.mxu3 }
 0x451   :  { %v3729_v7 = vadd.f32 %v3728_v35, %v3692_v16 }
 0x453   :  { %v3769_v8 = vadd.f32 %v3768_v20, %v3729_v7 }
 0x45e   :  { %v3695_v2 = vpop.f32.mrf.mxu1 }
 0x466   :  { %v3653_v60 = vpop.f32.mrf.mxu0  ;;  %v3733_v0 = vpop.f32.mrf.mxu2 }
 0x467   :  { %v3696_v62 = vadd.f32 %v3695_v2, %v3653_v60 }
 0x468   :  { %v3774_v26 = vpop.f32.mrf.mxu3 }
 0x469   :  { %v3734_v6 = vadd.f32 %v3733_v0, %v3696_v62 }
 0x46b   :  { %v3775_v14 = vadd.f32 %v3774_v26, %v3734_v6 }
 0x476   :  { %v5916_v9 = vpop.f32.mrf.mxu1 }
 0x47e   :  { %v5920_v52 = vpop.f32.mrf.mxu0  ;;  %v3838_v21 = vpop.f32.mrf.mxu1 }
 0x47f   :  { %v3700_v47 = vadd.f32 %v5916_v9, %v5920_v52  ;;  %v3738_v2 = vpop.f32.mrf.mxu2 }
 0x480   :  { %v3780_v54 = vpop.f32.mrf.mxu3 }
 0x481   :  { %v3739_v60 = vadd.f32 %v3738_v2, %v3700_v47 }
 0x483   :  { %v3781_v45 = vadd.f32 %v3780_v54, %v3739_v60 }
 0x486   :  { %v3804_v36 = vpop.f32.mrf.mxu0  ;;  %v3842_v32 = vpop.f32.mrf.mxu1 }
 0x487   :  { %v3805_v37 = vadd.f32 %v3804_v36, %v3763_v13 }
 0x489   :  { %v3839_v3 = vadd.f32 %v3838_v21, %v3805_v37 }
 0x48b   :  { %v3857_v59 = vrot.slane %v3839_v3, 4  ;;  %v3863_v10 = vsel %vm3610_vm8, %v3839_v3, 0 }
 0x48c   :  { %v3880_v19 = vand.u32 4294901760, %v3863_v10 }
 0x48d   :  { %v4011_v29 = vsel %vm3610_vm8, %v3857_v59, 0 }
 0x48e   :  { %v3907_v34 = vsub.f32 %v3863_v10, %v3880_v19  ;;  %v3808_v43 = vpop.f32.mrf.mxu0  ;;  %3881 = vmatpush.msrb.mxu2 %v3880_v19  ;;  %v5933_v33 = vand.u32 4294901760, %v4011_v29  ;;  %v3846_v23 = vpop.f32.mrf.mxu1 }
 0x48f   :  { %v3809_v15 = vadd.f32 %v3808_v43, %v3769_v8  ;;  %3887 = vmatmul.f32.vlgmr.msrb.gmra.mxu2 %v5930_v39 }
 0x490   :  { %3934 = vmatpush.msra.mxu2 %v3907_v34  ;;  %4105 = vmatpush.msra.mxu1 %v5933_v33  ;;  %v3908_v44 = vand.u32 4294901760, %v3907_v34  ;;  %v4055_v1 = vsub.f32 %v4011_v29, %v5933_v33 }
 0x491   :  { %v3843_v25 = vadd.f32 %v3842_v32, %v3809_v15  ;;  %4109 = vmatmul.f32.vlgmr.msra.gmra.mxu1 %v5925_v40 }
 0x492   :  { %3983 = vmatpush.msrb.mxu2 %v3908_v44  ;;  %4082 = vmatpush.msra.mxu0 %v4055_v1  ;;  %v3909_v42 = vsub.f32 %v3907_v34, %v3908_v44  ;;  %v4056_v41 = vand.u32 4294901760, %v4055_v1 }
 0x493   :  { %v3858_v57 = vrot.slane %v3843_v25, 4  ;;  %v4159_v48 = vsel %vm3610_vm8, %v3843_v25, 0  ;;  %4085 = vmatmul.f32.vlgmr.msra.gmra.mxu0 %v5922_v49 }
 0x494   :  { %v5941_v27 = vand.u32 4294901760, %v4159_v48  ;;  %v3910_v22 = vand.u32 4294901760, %v3909_v42  ;;  %v4057_v56 = vsub.f32 %v4055_v1, %v4056_v41 }
 0x495   :  { %v4307_v38 = vsel %vm3610_vm8, %v3858_v57, 0 }
 0x496   :  { %v4203_v30 = vsub.f32 %v4159_v48, %v5941_v27  ;;  %v5945_v53 = vand.u32 4294901760, %v4307_v38  ;;  %3911 = vmatpush.msrb.mxu3 %v3910_v22  ;;  %4177 = vmatpush.msrb.mxu0 %v5941_v27  ;;  %v3812_v51 = vpop.f32.mrf.mxu0  ;;  %v4058_v12 = vand.u32 4294901760, %v4057_v56  ;;  %v3850_v13 = vpop.f32.mrf.mxu1 }
 0x497   :  { %5171 = vmatmul.msk.f32.vlgmr.msrb.gmra.mxu3 %vm3601_vm9, %v5270_v28  ;;  %3937 = vmatmul.f32.vlgmr.msra.gmra.mxu2 %v5922_v49  ;;  %v3813_v63 = vadd.f32 %v3812_v51, %v3775_v14 }
 0x498   :  { %v5952_v4 = vsub.f32 %v4307_v38, %v5945_v53  ;;  %3957 = vmatpush.msra.mxu3 %v3880_v19  ;;  %4029 = vmatpush.msra.mxu2 %v5933_v33  ;;  %v4204_v17 = vand.u32 4294901760, %v4203_v30 }
 0x499   :  { %v3847_v24 = vadd.f32 %v3846_v23, %v3813_v63 }
 0x49a   :  { %4005 = vmatpush.msrb.mxu3 %v3880_v19  ;;  %4279 = vmatpush.msra.mxu0 %v4204_v17  ;;  %v4205_v46 = vsub.f32 %v4203_v30, %v4204_v17  ;;  %v4352_v35 = vand.u32 4294901760, %v5952_v4 }
 0x49b   :  { %4183 = vmatmul.f32.vlgmr.msrb.gmra.mxu0 %v5930_v39  ;;  %v4455_v31 = vsel %vm3610_vm8, %v3847_v24, 0  ;;  %v3859_v21 = vrot.slane %v3847_v24, 4 }
 0x49c   :  { %4378 = vmatpush.msrb.mxu0 %v5952_v4  ;;  %v4206_v58 = vand.u32 4294901760, %v4205_v46  ;;  %v5960_v55 = vand.u32 4294901760, %v4455_v31  ;;  %v4353_v59 = vsub.f32 %v5952_v4, %v4352_v35 }
 0x49d   :  { %v4603_v36 = vsel %vm3610_vm8, %v3859_v21, 0 }
 0x49e   :  { %4207 = vmatpush.msrb.mxu1 %v4206_v58  ;;  %v4499_v18 = vsub.f32 %v4455_v31, %v5960_v55  ;;  %v3816_v52 = vpop.f32.mrf.mxu0  ;;  %v4620_v61 = vand.u32 4294901760, %v4603_v36  ;;  %v4354_v19 = vand.u32 4294901760, %v4353_v59 }
 0x49f   :  { %3961 = vmatmul.f32.vlgmr.msra.gmra.mxu3 %v5925_v40  ;;  %5172 = vmatmul.msk.f32.vlgmr.msrb.gmra.mxu2 %vm3601_vm9, %v5270_v28  ;;  %v3817_v50 = vadd.f32 %v3816_v52, %v3781_v45 }
 0x4a0   :  { %4059 = vmatpush.msra.mxu3 %v4058_v12  ;;  %4131 = vmatpush.msrb.mxu2 %v4056_v41  ;;  %v4500_v9 = vand.u32 4294901760, %v4499_v18  ;;  %v4647_v7 = vsub.f32 %v4603_v36, %v4620_v61 }
 0x4a1   :  { %5177 = vmatmul.msk.f32.vlgmr.msrb.gmra.mxu1 %vm3601_vm9, %v5270_v28  ;;  %v3851_v16 = vadd.f32 %v3850_v13, %v3817_v50 }
 0x4a2   :  { %4301 = vmatpush.msra.mxu1 %v5941_v27  ;;  %v4501_v5 = vsub.f32 %v4499_v18, %v4500_v9  ;;  %v4648_v32 = vand.u32 4294901760, %v4647_v7 }
 0x4a3   :  { %5178 = vmatmul.msk.f32.vlgmr.msra.gmra.mxu0 %vm3601_vm9, %v5270_v28  ;;  %v4751_v37 = vsel %vm3610_vm8, %v3851_v16, 0  ;;  %v3860_v29 = vrot.slane %v3851_v16, 4 }
 0x4a4   :  { %4401 = vmatpush.msrb.mxu1 %v5945_v53  ;;  %4473 = vmatpush.msra.mxu0 %v5960_v55  ;;  %v4502_v11 = vand.u32 4294901760, %v4501_v5  ;;  %v4768_v3 = vand.u32 4294901760, %v4751_v37  ;;  %v4649_v15 = vsub.f32 %v4647_v7, %v4648_v32 }
 0x4a5   :  { %v4899_v34 = vsel %vm3610_vm8, %v3860_v29, 0 }
 0x4a6   :  { %v4795_v10 = vsub.f32 %v4751_v37, %v4768_v3  ;;  %v4916_v43 = vand.u32 4294901760, %v4899_v34  ;;  %v4650_v44 = vand.u32 4294901760, %v4649_v15 }
 0x4a7   :  { %5173 = vmatmul.msk.f32.vlgmr.msrb.gmra.mxu3 %vm3601_vm9, %v5270_v28  ;;  %4035 = vmatmul.f32.vlgmr.msra.gmra.mxu2 %v5930_v39 }
 0x4a8   :  { %4153 = vmatpush.msrb.mxu3 %v5933_v33  ;;  %4230 = vmatpush.msra.mxu2 %v4203_v30  ;;  %v4796_v20 = vand.u32 4294901760, %v4795_v10  ;;  %v4943_v33 = vsub.f32 %v4899_v34, %v4916_v43 }
 0x4a9   :  { %5179 = vmatmul.msk.f32.vlgmr.msra.gmra.mxu1 %vm3601_vm9, %v5270_v28 }
 0x4aa   :  { %4503 = vmatpush.msra.mxu1 %v4502_v11  ;;  %v4797_v62 = vsub.f32 %v4795_v10, %v4796_v20  ;;  %v4944_v1 = vand.u32 4294901760, %v4943_v33 }
 0x4ab   :  { %4381 = vmatmul.f32.vlgmr.msrb.gmra.mxu0 %v5922_v49 }
 0x4ac   :  { %4575 = vmatpush.msrb.mxu0 %v4500_v9  ;;  %v4798_v8 = vand.u32 4294901760, %v4797_v62  ;;  %v4945_v0 = vsub.f32 %v4943_v33, %v4944_v1 }
 0x4ae   :  { %v4946_v25 = vand.u32 4294901760, %v4945_v0 }
 0x4af   :  { %5174 = vmatmul.msk.f32.vlgmr.msra.gmra.mxu3 %vm3601_vm9, %v5270_v28  ;;  %5175 = vmatmul.msk.f32.vlgmr.msrb.gmra.mxu2 %vm3601_vm9, %v5270_v28 }
 0x4b0   :  { %4253 = vmatpush.msra.mxu3 %v5941_v27  ;;  %4325 = vmatpush.msrb.mxu2 %v5945_v53 }
 0x4b1   :  { %4405 = vmatmul.f32.vlgmr.msrb.gmra.mxu1 %v5925_v40 }
 0x4b2   :  { %4597 = vmatpush.msrb.mxu1 %v5960_v55 }
 0x4b3   :  { %4479 = vmatmul.f32.vlgmr.msra.gmra.mxu0 %v5930_v39 }
 0x4b4   :  { %4674 = vmatpush.msra.mxu0 %v4647_v7 }
 0x4b7   :  { %5176 = vmatmul.msk.f32.vlgmr.msrb.gmra.mxu3 %vm3601_vm9, %v5270_v28  ;;  %4233 = vmatmul.f32.vlgmr.msra.gmra.mxu2 %v5922_v49 }
 0x4b8   :  { %4355 = vmatpush.msrb.mxu3 %v4354_v19  ;;  %4427 = vmatpush.msra.mxu2 %v4352_v35 }
 0x4b9   :  { %5183 = vmatmul.msk.f32.vlgmr.msra.gmra.mxu1 %vm3601_vm9, %v5270_v28 }
 0x4ba   :  { %4697 = vmatpush.msra.mxu1 %v4620_v61 }
 0x4bb   :  { %5184 = vmatmul.msk.f32.vlgmr.msrb.gmra.mxu0 %vm3601_vm9, %v5270_v28 }
 0x4bc   :  { %4769 = vmatpush.msrb.mxu0 %v4768_v3 }
 0x4bf   :  { %4257 = vmatmul.f32.vlgmr.msra.gmra.mxu3 %v5925_v40  ;;  %4331 = vmatmul.f32.vlgmr.msrb.gmra.mxu2 %v5930_v39 }
 0x4c0   :  { %4449 = vmatpush.msra.mxu3 %v5945_v53  ;;  %4526 = vmatpush.msrb.mxu2 %v4499_v18 }
 0x4c1   :  { %5185 = vmatmul.msk.f32.vlgmr.msrb.gmra.mxu1 %vm3601_vm9, %v5270_v28 }
 0x4c2   :  { %4799 = vmatpush.msrb.mxu1 %v4798_v8 }
 0x4c3   :  { %4677 = vmatmul.f32.vlgmr.msra.gmra.mxu0 %v5922_v49 }
 0x4c4   :  { %4871 = vmatpush.msra.mxu0 %v4796_v20 }
 0x4c7   :  { %5180 = vmatmul.msk.f32.vlgmr.msrb.gmra.mxu3 %vm3601_vm9, %v5270_v28  ;;  %5181 = vmatmul.msk.f32.vlgmr.msra.gmra.mxu2 %vm3601_vm9, %v5270_v28 }
 0x4c8   :  { %4549 = vmatpush.msrb.mxu3 %v5960_v55  ;;  %4621 = vmatpush.msra.mxu2 %v4620_v61 }
 0x4c9   :  { %4701 = vmatmul.f32.vlgmr.msra.gmra.mxu1 %v5925_v40 }
 0x4ca   :  { %4893 = vmatpush.msra.mxu1 %v4768_v3 }
 0x4cb   :  { %4775 = vmatmul.f32.vlgmr.msrb.gmra.mxu0 %v5930_v39 }
 0x4cc   :  { %4970 = vmatpush.msrb.mxu0 %v4943_v33 }
 0x4cf   :  { %5182 = vmatmul.msk.f32.vlgmr.msra.gmra.mxu3 %vm3601_vm9, %v5270_v28  ;;  %4529 = vmatmul.f32.vlgmr.msrb.gmra.mxu2 %v5922_v49 }
 0x4d0   :  { %4651 = vmatpush.msra.mxu3 %v4650_v44  ;;  %4723 = vmatpush.msrb.mxu2 %v4648_v32 }
 0x4d1   :  { %5189 = vmatmul.msk.f32.vlgmr.msrb.gmra.mxu1 %vm3601_vm9, %v5270_v28 }
 0x4d2   :  { %4993 = vmatpush.msrb.mxu1 %v4916_v43 }
 0x4d3   :  { %5190 = vmatmul.msk.f32.vlgmr.msra.gmra.mxu0 %vm3601_vm9, %v5270_v28 }
 0x4d7   :  { %4553 = vmatmul.f32.vlgmr.msrb.gmra.mxu3 %v5925_v40  ;;  %4627 = vmatmul.f32.vlgmr.msra.gmra.mxu2 %v5930_v39 }
 0x4d8   :  { %4745 = vmatpush.msrb.mxu3 %v4620_v61  ;;  %4822 = vmatpush.msra.mxu2 %v4795_v10  ;;  %v5234_v10 = vmov 1983009808  }
 0x4d9   :  { %5191 = vmatmul.msk.f32.vlgmr.msra.gmra.mxu1 %vm3601_vm9, %v5270_v28  ;;  %v5059_v19 = vunpack.c.l.s4 %v5234_v10 }
 0x4db   :  { %4973 = vmatmul.f32.vlgmr.msrb.gmra.mxu0 %v5922_v49  ;;  %v6042_v32 = vunpack.c.0.s8 %v5059_v19 }
 0x4df   :  { %5186 = vmatmul.msk.f32.vlgmr.msra.gmra.mxu3 %vm3601_vm9, %v5270_v28  ;;  %5187 = vmatmul.msk.f32.vlgmr.msrb.gmra.mxu2 %vm3601_vm9, %v5270_v28 }
 0x4e0   :  { %4845 = vmatpush.msra.mxu3 %v4768_v3  ;;  %4917 = vmatpush.msrb.mxu2 %v4916_v43 }
 0x4e1   :  { %4997 = vmatmul.f32.vlgmr.msrb.gmra.mxu1 %v5925_v40 }
 0x4e7   :  { %5188 = vmatmul.msk.f32.vlgmr.msrb.gmra.mxu3 %vm3601_vm9, %v5270_v28  ;;  %4825 = vmatmul.f32.vlgmr.msra.gmra.mxu2 %v5922_v49 }
 0x4e8   :  { %4947 = vmatpush.msrb.mxu3 %v4946_v25  ;;  %5019 = vmatpush.msra.mxu2 %v4944_v1 }
 0x4ef   :  { %4849 = vmatmul.f32.vlgmr.msra.gmra.mxu3 %v5925_v40  ;;  %4923 = vmatmul.f32.vlgmr.msrb.gmra.mxu2 %v5930_v39 }
 0x4f0   :  { %5041 = vmatpush.msra.mxu3 %v4916_v43 }
 0x4f7   :  { %5192 = vmatmul.msk.f32.vlgmr.msrb.gmra.mxu3 %vm3601_vm9, %v5270_v28  ;;  %5193 = vmatmul.msk.f32.vlgmr.msra.gmra.mxu2 %vm3601_vm9, %v5270_v28 }
 0x4ff   :  { %5194 = vmatmul.msk.f32.vlgmr.msra.gmra.mxu3 %vm3601_vm9, %v5270_v28 }
 0x50e   :  { %v4110_v39 = vpop.f32.mrf.mxu1 }
 0x510   :  { %v4086_v27 = vpop.f32.mrf.mxu0 }
 0x512   :  { %v3888_v6 = vpop.f32.mrf.mxu2 }
 0x518   :  { %v4184_v14 = vpop.f32.mrf.mxu0 }
 0x51a   :  { %v3914_v42 = vpop.f32.mrf.mxu3  ;;  %v3938_v57 = vpop.f32.mrf.mxu2 }
 0x51b   :  { %v3915_v49 = vadd.f32 %v3914_v42, %v3888_v6 }
 0x51d   :  { %v3939_v48 = vadd.f32 %v3938_v57, %v3915_v49 }
 0x51e   :  { %v4210_v51 = vpop.f32.mrf.mxu1 }
 0x51f   :  { %v4211_v12 = vadd.f32 %v4210_v51, %v4184_v14 }
 0x520   :  { %v4282_v28 = vpop.f32.mrf.mxu0 }
 0x522   :  { %v3962_v22 = vpop.f32.mrf.mxu3  ;;  %v3986_v40 = vpop.f32.mrf.mxu2 }
 0x523   :  { %v3963_v26 = vadd.f32 %v3962_v22, %v3939_v48 }
 0x525   :  { %v3987_v38 = vadd.f32 %v3986_v40, %v3963_v26 }
 0x526   :  { %v4304_v46 = vpop.f32.mrf.mxu1 }
 0x528   :  { %v4382_v55 = vpop.f32.mrf.mxu0 }
 0x52a   :  { %v4008_v30 = vpop.f32.mrf.mxu3  ;;  %v4036_v53 = vpop.f32.mrf.mxu2 }
 0x52b   :  { %v4009_v41 = vadd.f32 %v4008_v30, %v3987_v38 }
 0x52d   :  { %v5047_v8 = vmul.f32 0.0013717421, %v4009_v41 }
 0x52e   :  { %v4406_v18 = vpop.f32.mrf.mxu1 }
 0x530   :  { %v4480_v54 = vpop.f32.mrf.mxu0 }
 0x532   :  { %v4062_v63 = vpop.f32.mrf.mxu3  ;;  %v4134_v4 = vpop.f32.mrf.mxu2 }
 0x533   :  { %v4063_v17 = vadd.f32 %v4062_v63, %v4036_v53 }
 0x535   :  { %v4087_v23 = vadd.f32 %v4086_v27, %v4063_v17 }
 0x536   :  { %v4506_v21 = vpop.f32.mrf.mxu1 }
 0x537   :  { %v4111_v24 = vadd.f32 %v4110_v39, %v4087_v23 }
 0x538   :  { %v4578_v35 = vpop.f32.mrf.mxu0 }
 0x539   :  { %v4135_v56 = vadd.f32 %v4134_v4, %v4111_v24  ;;  %v4507_v4 = vadd.f32 %v4506_v21, %v4480_v54 }
 0x53a   :  { %v4156_v47 = vpop.f32.mrf.mxu3  ;;  %v4234_v31 = vpop.f32.mrf.mxu2 }
 0x53b   :  { %v4157_v58 = vadd.f32 %v4156_v47, %v4135_v56  ;;  %v4235_v9 = vadd.f32 %v4234_v31, %v4211_v12 }
 0x53d   :  { %v5048_v34 = vmul.f32 0.0013717421, %v4157_v58 }
 0x53e   :  { %v4600_v29 = vpop.f32.mrf.mxu1 }
 0x540   :  { %v4678_v42 = vpop.f32.mrf.mxu0 }
 0x542   :  { %v4258_v2 = vpop.f32.mrf.mxu3  ;;  %v4332_v60 = vpop.f32.mrf.mxu2 }
 0x543   :  { %v4259_v5 = vadd.f32 %v4258_v2, %v4235_v9 }
 0x545   :  { %v4283_v52 = vadd.f32 %v4282_v28, %v4259_v5 }
 0x546   :  { %v4702_v49 = vpop.f32.mrf.mxu1 }
 0x547   :  { %v4305_v13 = vadd.f32 %v4304_v46, %v4283_v52 }
 0x548   :  { %v4776_v22 = vpop.f32.mrf.mxu0 }
 0x549   :  { %v5049_v37 = vmul.f32 0.0013717421, %v4305_v13  ;;  %v5235_v13 = vmov 1934713408  }
 0x54a   :  { %v4358_v45 = vpop.f32.mrf.mxu3  ;;  %v4430_v50 = vpop.f32.mrf.mxu2 }
 0x54b   :  { %v4359_v11 = vadd.f32 %v4358_v45, %v4332_v60  ;;  %v5055_v20 = vrot.slane %v5049_v37, 4 }
 0x54d   :  { %v4383_v16 = vadd.f32 %v4382_v55, %v4359_v11  ;;  %v5057_v33 = vsel %vm5056_vm10, %v5055_v20, %v5047_v8 }
 0x54e   :  { %v5061_v25 = vperm.slane %v5057_v33, %v6042_v32  ;;  %v4802_v26 = vpop.f32.mrf.mxu1 }
 0x54f   :  { %v4407_v36 = vadd.f32 %v4406_v18, %v4383_v16  ;;  %v4803_v38 = vadd.f32 %v4802_v26, %v4776_v22  ;;  %v5083_v16 = vunpack.c.l.s4 %v5235_v13 }
 0x550   :  { %v4874_v14 = vpop.f32.mrf.mxu0 }
 0x551   :  { %v4431_v61 = vadd.f32 %v4430_v50, %v4407_v36 }
 0x552   :  { %v4452_v3 = vpop.f32.mrf.mxu3  ;;  %v4530_v7 = vpop.f32.mrf.mxu2 }
 0x553   :  { %v4453_v59 = vadd.f32 %v4452_v3, %v4431_v61  ;;  %v4531_v23 = vadd.f32 %v4530_v7, %v4507_v4 }
 0x555   :  { %v5050_v62 = vmul.f32 0.0013717421, %v4453_v59  ;;  %v5084_v59 = vunpack.c.0.s8 %v5083_v16 }
 0x556   :  { %v4896_v53 = vpop.f32.mrf.mxu1 }
 0x557   :  { %v5062_v43 = vrot.slane %v5050_v62, 4 }
 0x558   :  { %v4974_v56 = vpop.f32.mrf.mxu0 }
 0x559   :  { %v5063_v15 = vsel %vm5056_vm10, %v5062_v43, %v5048_v34 }
 0x55a   :  { %v5067_v44 = vperm.slane %v5063_v15, %v6042_v32  ;;  %v4554_v1 = vpop.f32.mrf.mxu3  ;;  %v4628_v0 = vpop.f32.mrf.mxu2 }
 0x55b   :  { %v4555_v47 = vadd.f32 %v4554_v1, %v4531_v23 }
 0x55c   :  { %v5080_v6 = vrot.slane %v5067_v44, 4 }
 0x55d   :  { %v4579_v60 = vadd.f32 %v4578_v35, %v4555_v47 }
 0x55e   :  { %v5081_v57 = vsel %vm5056_vm10, %v5080_v6, %v5061_v25  ;;  %v4998_v55 = vpop.f32.mrf.mxu1 }
 0x55f   :  { %v4601_v54 = vadd.f32 %v4600_v29, %v4579_v60  ;;  %v5085_v20 = vperm.slane %v5081_v57, %v5084_v59 }
 0x561   :  { %v5051_v61 = vmul.f32 0.0013717421, %v4601_v54  ;;  %v5094_v43 = vrot.slane %v5085_v20, 4 }
 0x562   :  { %v4654_v48 = vpop.f32.mrf.mxu3  ;;  %v4726_v27 = vpop.f32.mrf.mxu2 }
 0x563   :  { %v4655_v41 = vadd.f32 %v4654_v48, %v4628_v0 }
 0x565   :  { %v4679_v28 = vadd.f32 %v4678_v42, %v4655_v41 }
 0x567   :  { %v4703_v31 = vadd.f32 %v4702_v49, %v4679_v28 }
 0x569   :  { %v4727_v9 = vadd.f32 %v4726_v27, %v4703_v31 }
 0x56a   :  { %v4748_v40 = vpop.f32.mrf.mxu3  ;;  %v4826_v39 = vpop.f32.mrf.mxu2 }
 0x56b   :  { %v4827_v51 = vadd.f32 %v4826_v39, %v4803_v38  ;;  %v4749_v11 = vadd.f32 %v4748_v40, %v4727_v9 }
 0x56d   :  { %v5052_v3 = vmul.f32 0.0013717421, %v4749_v11 }
 0x572   :  { %v4850_v30 = vpop.f32.mrf.mxu3  ;;  %v4924_v63 = vpop.f32.mrf.mxu2 }
 0x573   :  { %v4851_v17 = vadd.f32 %v4850_v30, %v4827_v51 }
 0x575   :  { %v4875_v24 = vadd.f32 %v4874_v14, %v4851_v17 }
 0x577   :  { %v4897_v12 = vadd.f32 %v4896_v53, %v4875_v24 }
 0x579   :  { %v5053_v52 = vmul.f32 0.0013717421, %v4897_v12 }
 0x57a   :  { %v4950_v46 = vpop.f32.mrf.mxu3  ;;  %v5022_v2 = vpop.f32.mrf.mxu2 }
 0x57b   :  { %v4951_v58 = vadd.f32 %v4950_v46, %v4924_v63  ;;  %v5068_v36 = vrot.slane %v5053_v52, 4 }
 0x57d   :  { %v4975_v18 = vadd.f32 %v4974_v56, %v4951_v58  ;;  %v5069_v10 = vsel %vm5056_vm10, %v5068_v36, %v5051_v61 }
 0x57e   :  { %v5073_v62 = vperm.slane %v5069_v10, %v6042_v32 }
 0x57f   :  { %v4999_v5 = vadd.f32 %v4998_v55, %v4975_v18 }
 0x581   :  { %v5023_v45 = vadd.f32 %v5022_v2, %v4999_v5 }
 0x582   :  { %v5044_v50 = vpop.f32.mrf.mxu3 }
 0x583   :  { %v5045_v21 = vadd.f32 %v5044_v50, %v5023_v45 }
 0x585   :  { %v5054_v37 = vmul.f32 0.0013717421, %v5045_v21 }
 0x587   :  { %v5074_v7 = vrot.slane %v5054_v37, 4 }
 0x589   :  { %v5075_v35 = vsel %vm5056_vm10, %v5074_v7, %v5052_v3 }
 0x58a   :  { %v5079_v19 = vperm.slane %v5075_v35, %v6042_v32 }
 0x58c   :  { %v5086_v29 = vrot.slane %v5079_v19, 4 }
 0x58e   :  { %v5087_v8 = vsel %vm5056_vm10, %v5086_v29, %v5073_v62 }
 0x58f   :  { %v5091_v34 = vperm.slane %v5087_v8, %v5084_v59 }
 0x591   :  { %v5092_v33 = vrot.slane %v5091_v34, 4  ;;  %v5095_v15 = vsel %vm5056_vm10, %v5091_v34, %v5094_v43 }
 0x592   :  { %5097 = vrot.lane.b32.xlu0 %v5095_v15, %s5236_s0 }
 0x593   :  { %v5093_v44 = vsel %vm5056_vm10, %v5092_v33, %v5085_v20 }
 0x604   :  { %v5098_v1 = vpop.permute.xlu0 %5097 }
 0x605   :  { %v5101_v0 = vsel %vm5100_vm11, %v5093_v44, %v5098_v1 }
 0x606   :  { %5102 = vst.msk [vmem:[%s6061_s1] sm:$0xff] %vm3601_vm9, %v5101_v0 }
 0x607   :  { %5107 = vsyncpa [#allocation3], 1 }

</bundles_post_ra>
